<compile_context>
chip_gen: v7x
topology: tpu7x:2x2x1
jax: 0.10.0
libtpu: 0.0.40
codegen_flags: <defaults>
</compile_context>

<pallas_src>
import functools

import numpy as np

import jax
import jax.numpy as jnp
from jax import lax
from jax.experimental import pallas as pl
from jax.experimental.pallas import tpu as pltpu


def _resblock_kernel(x_ref, a1_ref, b1_ref, a2_ref, b2_ref, out_ref, h1_ref, *, H):
    """One grid step = B batch elements flattened to M = B*H lane-dense rows.

    x_ref   : (M, W*Cin)        f32   lane-dense input rows
    a1_ref  : (W*Cin,  3*W*Cout) bf16 fused banded conv1 weights [A0|A1|A2],
                                      BN1 scale folded into the columns
    a2_ref  : (W*Cout, 3*W*Cout) bf16 fused banded conv2 weights, BN2 scale folded
    b1_ref / b2_ref : (1, W*Cout) f32 folded BatchNorm biases
    out_ref : (M, W*Cout)
    h1_ref  : (M, W*Cout) bf16 VMEM scratch for the intermediate activation
    """
    M = x_ref.shape[0]
    WCo = out_ref.shape[-1]

    # Row masks shared by both convs: row r belongs to image row h = r % H;
    # the +/-1 H shifts must read zero across an image (batch) boundary.
    h_idx = lax.broadcasted_iota(jnp.int32, (M, WCo), 0) % H
    not_top = h_idx != 0            # keep kh=0 contribution except at h == 0
    not_bot = h_idx != (H - 1)      # keep kh=2 contribution except at h == H-1

    def conv3x3(flat_bf16, a_ref, b_ref):
        # Single fused lane-dense matmul against [A0 | A1 | A2]; kw taps, the
        # W-direction zero padding and the BN scale are all folded into the
        # banded columns.  f32 accumulation on the MXU.
        t = jnp.dot(flat_bf16, a_ref[...], preferred_element_type=jnp.float32)
        out = t[:, WCo:2 * WCo] + b_ref[...]                       # kh = 1 + bias
        # out[r] += t0[r-1] (kh = 0): sublane roll on the XLU, masked at h == 0.
        out += jnp.where(not_top, pltpu.roll(t[:, :WCo], 1, 0), 0.0)
        # out[r] += t2[r+1] (kh = 2): roll by M-1 (== -1 mod M), masked at h == H-1.
        out += jnp.where(not_bot, pltpu.roll(t[:, 2 * WCo:], M - 1, 0), 0.0)
        return out

    x = x_ref[...]                                                 # (M, W*Cin) f32
    # conv1 -> folded BN1 -> ReLU, staged as bf16 in VMEM (conv2's LHS dtype).
    h1_ref[...] = jnp.maximum(
        conv3x3(x.astype(jnp.bfloat16), a1_ref, b1_ref), 0.0).astype(jnp.bfloat16)
    # conv2 -> folded BN2 -> identity residual -> ReLU (f32 epilogue).
    h2 = conv3x3(h1_ref[...], a2_ref, b2_ref)
    out_ref[...] = jnp.maximum(h2 + x, 0.0).astype(out_ref.dtype)


def _band_weights(w_hwio, width):
    """(3, 3, Cin, Cout) HWIO -> (3, width*Cin, width*Cout) banded matrices.

    A[kh, w_in*Cin + ci, w_out*Cout + co] = w_hwio[kh, w_in - w_out + 1, ci, co]
    when |w_in - w_out| <= 1, else 0.  The kw taps and the zero padding along W
    are folded into the band structure; the kh taps become +/-1 row shifts.
    """
    kh, kw, cin, cout = w_hwio.shape
    assert (kh, kw) == (3, 3)
    sel = np.zeros((kw, width, width), np.float32)    # sel[kw, w_in, w_out]
    for k in range(kw):
        for wo in range(width):
            wi = wo + k - 1
            if 0 <= wi < width:
                sel[k, wi, wo] = 1.0
    a = jnp.einsum("kab,hkio->haibo", jnp.asarray(sel), w_hwio)
    return a.reshape(3, width * cin, width * cout)


def _pick_batch_block(n, h):
    """Largest divisor of n with ~>=128 matmul rows per step; keep the grid
    >= 2 (even) when the batch allows it so both v7x TensorCores get work."""
    want = max(1, -(-128 // h))          # ceil(128 / h)
    best = 1
    for d in range(1, n + 1):
        if n % d == 0 and d <= want:
            best = d
    if best == n and n % 2 == 0 and (n // 2) * h >= 128:
        best = n // 2
    return best


def res_basic_block_rows(x_rows, params, *, height, width, batch_block=None):
    """Pallas forward pass on the lane-dense row layout (N*H, W*C).

    Keeping activations in this layout across consecutive ResBlocks (and
    converting NCHW <-> rows once per network) avoids per-block HBM relayouts.
    """
    H, W = height, width
    NH, WCi = x_rows.shape
    N = NH // H
    w1 = params["w1_hwio"]            # (3, 3, Cin, Cout)
    w2 = params["w2_hwio"]            # (3, 3, Cout, Cout)
    Cin, Cout = w1.shape[2], w1.shape[3]
    assert WCi == W * Cin
    # identity residual path only (stride=1, downsample=None)
    assert Cin == Cout, "identity residual requires Cin == Cout"
    WCo = W * Cout

    B = batch_block if batch_block is not None else _pick_batch_block(N, H)
    assert N % B == 0
    Mb = B * H                         # matmul M per grid step

    def lane_tile(v):                  # per-channel (Cout,) -> lane-dense (W*Cout,)
        return jnp.tile(v.reshape(-1), W)

    # Banded conv weights with the BN scale folded into the columns (in f32,
    # before the bf16 cast), then the three kh matrices concatenated along the
    # output axis -> one fused MXU matmul per conv.
    a1 = _band_weights(w1, W) * lane_tile(params["s1"])[None, None, :]
    a2 = _band_weights(w2, W) * lane_tile(params["s2"])[None, None, :]
    a1_cat = jnp.concatenate([a1[0], a1[1], a1[2]], axis=1).astype(jnp.bfloat16)
    a2_cat = jnp.concatenate([a2[0], a2[1], a2[2]], axis=1).astype(jnp.bfloat16)
    b1 = lane_tile(params["b1"]).reshape(1, WCo).astype(jnp.float32)
    b2 = lane_tile(params["b2"]).reshape(1, WCo).astype(jnp.float32)

    kernel = functools.partial(_resblock_kernel, H=H)

    out_rows = pl.pallas_call(
        kernel,
        out_shape=jax.ShapeDtypeStruct((NH, WCo), x_rows.dtype),
        grid_spec=pltpu.PrefetchScalarGridSpec(
            num_scalar_prefetch=0,
            grid=(N // B,),
            in_specs=[
                pl.BlockSpec((Mb, WCi), lambda i: (i, 0)),
                pl.BlockSpec((WCi, 3 * WCo), lambda i: (0, 0)),
                pl.BlockSpec((1, WCo), lambda i: (0, 0)),
                pl.BlockSpec((WCo, 3 * WCo), lambda i: (0, 0)),
                pl.BlockSpec((1, WCo), lambda i: (0, 0)),
            ],
            out_specs=pl.BlockSpec((Mb, WCo), lambda i: (i, 0)),
            scratch_shapes=[pltpu.VMEM((Mb, WCo), jnp.bfloat16)],
        ),
        compiler_params=pltpu.CompilerParams(
            dimension_semantics=("parallel",),
            vmem_limit_bytes=32 * 1024 * 1024,
        ),
    )(x_rows, a1_cat, b1, a2_cat, b2)
    return out_rows


def res_basic_block(x_nchw, params, *, batch_block=None):
    """NCHW wrapper around the row-layout kernel. x_nchw: (N, C, H, W) f32."""
    N, Cin, H, W = x_nchw.shape
    # NCHW -> NHWC -> lane-dense rows (N*H, W*C); layout plumbing outside the kernel.
    x_rows = jnp.transpose(x_nchw, (0, 2, 3, 1)).reshape(N * H, W * Cin)
    out_rows = res_basic_block_rows(x_rows, params, height=H, width=W,
                                    batch_block=batch_block)
    Cout = params["w1_hwio"].shape[-1]
    return jnp.transpose(out_rows.reshape(N, H, W, Cout), (0, 3, 1, 2))


def _make_params(key, cin, cout, eps=1e-5):
    ks = jax.random.split(key, 10)
    # conv weights in PyTorch OIHW layout, converted to HWIO for the kernel
    w1_oihw = 0.1 * jax.random.normal(ks[0], (cout, cin, 3, 3), jnp.float32)
    w2_oihw = 0.1 * jax.random.normal(ks[1], (cout, cout, 3, 3), jnp.float32)
    # BatchNorm params (eval mode), folded into per-channel scale/bias
    g1 = 1.0 + 0.1 * jax.random.normal(ks[2], (cout,), jnp.float32)
    be1 = 0.1 * jax.random.normal(ks[3], (cout,), jnp.float32)
    mu1 = 0.1 * jax.random.normal(ks[4], (cout,), jnp.float32)
    v1 = jax.random.uniform(ks[5], (cout,), jnp.float32, 0.5, 1.5)
    g2 = 1.0 + 0.1 * jax.random.normal(ks[6], (cout,), jnp.float32)
    be2 = 0.1 * jax.random.normal(ks[7], (cout,), jnp.float32)
    mu2 = 0.1 * jax.random.normal(ks[8], (cout,), jnp.float32)
    v2 = jax.random.uniform(ks[9], (cout,), jnp.float32, 0.5, 1.5)

    s1 = g1 / jnp.sqrt(v1 + eps)
    b1 = be1 - mu1 * s1
    s2 = g2 / jnp.sqrt(v2 + eps)
    b2 = be2 - mu2 * s2

    return dict(
        w1_oihw=w1_oihw, w2_oihw=w2_oihw,
        w1_hwio=jnp.transpose(w1_oihw, (2, 3, 1, 0)),
        w2_hwio=jnp.transpose(w2_oihw, (2, 3, 1, 0)),
        s1=s1.reshape(1, cout), b1=b1.reshape(1, cout),
        s2=s2.reshape(1, cout), b2=b2.reshape(1, cout),
    )


def _reference_forward(x_nchw, params):
    """Pure-JAX reference mirroring the kernel's mixed precision: BN scale is
    folded into the f32 conv weights before the bf16 cast, convs accumulate in
    f32, bias / residual / ReLU stay in f32."""
    def conv(x_in, w_oihw, scale):
        w = w_oihw * scale.reshape(-1, 1, 1, 1)        # fold BN scale (f32)
        dn = lax.conv_dimension_numbers(x_in.shape, w.shape,
                                        ("NCHW", "OIHW", "NCHW"))
        return lax.conv_general_dilated(
            x_in.astype(jnp.bfloat16), w.astype(jnp.bfloat16),
            (1, 1), ((1, 1), (1, 1)), dimension_numbers=dn,
            preferred_element_type=jnp.float32)

    b1 = params["b1"].reshape(1, -1, 1, 1)
    b2 = params["b2"].reshape(1, -1, 1, 1)
    h1 = jnp.maximum(conv(x_nchw, params["w1_oihw"], params["s1"]) + b1, 0.0)
    h2 = conv(h1, params["w2_oihw"], params["s2"]) + b2
    return jnp.maximum(h2 + x_nchw, 0.0)


if __name__ == "__main__":
    # ResBasicBlock(in_channels=8, out_channels=8, stride=1, downsample=None)
    # N chosen so each grid step carries B*H = 128 matmul rows and the grid
    # stays at 2 (even) -> both v7x TensorCores busy; one fat step per core.
    N, C, H, W = 16, 8, 16, 16                 # W*C = 128 -> fully lane dense
    key = jax.random.PRNGKey(0)
    kx, kp = jax.random.split(key)
    x = jax.random.normal(kx, (N, C, H, W), jnp.float32)
    params = _make_params(kp, C, C)

    fwd = jax.jit(functools.partial(res_basic_block, batch_block=8))
    out = jax.block_until_ready(fwd(x, params))
    ref = jax.block_until_ready(_reference_forward(x, params))

    assert out.shape == (N, C, H, W)
    err = float(jnp.max(jnp.abs(out - ref)))
    assert err < 1e-3, err
    print("KERNEL_OK")
</pallas_src>

<mosaic_0001>
module attributes {stable_mosaic.version = 11 : i64} {
  func.func @_resblock_kernel(%arg0: i32, %arg1: memref<128x128xf32, #tpu.memory_space<vmem>>, %arg2: memref<128x384xbf16, #tpu.memory_space<vmem>>, %arg3: memref<1x128xf32, #tpu.memory_space<vmem>>, %arg4: memref<128x384xbf16, #tpu.memory_space<vmem>>, %arg5: memref<1x128xf32, #tpu.memory_space<vmem>>, %arg6: memref<128x128xf32, #tpu.memory_space<vmem>>, %arg7: memref<128x128xbf16, #tpu.memory_space<vmem>>) attributes {dimension_semantics = [#tpu.dimension_semantics<parallel>], iteration_bounds = array<i64: 2>, scalar_prefetch = 0 : i64, scratch_operands = 1 : i64, tpu.core_type = #tpu.core_type<tc>, window_params = [{transform_indices = @transform_0, window_bounds = array<i64: 128, 128>}, {pipeline_mode = #tpu.pipeline_mode<synchronous>, transform_indices = @transform_1, window_bounds = array<i64: 128, 384>}, {pipeline_mode = #tpu.pipeline_mode<synchronous>, transform_indices = @transform_2, window_bounds = array<i64: 1, 128>}, {pipeline_mode = #tpu.pipeline_mode<synchronous>, transform_indices = @transform_3, window_bounds = array<i64: 128, 384>}, {pipeline_mode = #tpu.pipeline_mode<synchronous>, transform_indices = @transform_4, window_bounds = array<i64: 1, 128>}, {transform_indices = @transform_5, window_bounds = array<i64: 128, 128>}]} {
    %0 = tpu.iota {dimensions = array<i32: 0>} : vector<128x128xi32>
    %c16_i32 = arith.constant 16 : i32
    %c0_i32 = arith.constant 0 : i32
    %1 = arith.cmpi eq, %c16_i32, %c0_i32 : i32
    %c1_i32 = arith.constant 1 : i32
    %2 = arith.select %1, %c1_i32, %c16_i32 : i32
    %3 = vector.broadcast %2 : i32 to vector<128x128xi32>
    %4 = arith.remsi %0, %3 : vector<128x128xi32>
    %c0_i32_0 = arith.constant 0 : i32
    %5 = vector.broadcast %c0_i32_0 : i32 to vector<128x128xi32>
    %6 = arith.cmpi ne, %4, %5 : vector<128x128xi32>
    %c0_i32_1 = arith.constant 0 : i32
    %7 = vector.broadcast %c0_i32_1 : i32 to vector<128x128xi32>
    %8 = arith.cmpi slt, %4, %7 : vector<128x128xi32>
    %c0_i32_2 = arith.constant 0 : i32
    %9 = arith.cmpi slt, %2, %c0_i32_2 : i32
    %10 = vector.broadcast %9 : i1 to vector<128x128xi1>
    %11 = vector.broadcast %10 : vector<128x128xi1> to vector<128x128xi1>
    %12 = arith.xori %8, %11 : vector<128x128xi1>
    %13 = arith.andi %12, %6 : vector<128x128xi1>
    %14 = vector.broadcast %2 : i32 to vector<128x128xi32>
    %15 = arith.addi %4, %14 : vector<128x128xi32>
    %16 = arith.select %13, %15, %4 : vector<128x128xi1>, vector<128x128xi32>
    %c0_i32_3 = arith.constant 0 : i32
    %17 = vector.broadcast %c0_i32_3 : i32 to vector<128x128xi32>
    %18 = arith.cmpi ne, %16, %17 : vector<128x128xi32>
    %c15_i32 = arith.constant 15 : i32
    %19 = vector.broadcast %c15_i32 : i32 to vector<128x128xi32>
    %20 = arith.cmpi ne, %16, %19 : vector<128x128xi32>
    %c0 = arith.constant 0 : index
    %c0_4 = arith.constant 0 : index
    %21 = vector.load %arg1[%c0, %c0_4] : memref<128x128xf32, #tpu.memory_space<vmem>>, vector<128x128xf32>
    %22 = arith.truncf %21 : vector<128x128xf32> to vector<128x128xbf16>
    %c0_5 = arith.constant 0 : index
    %c0_6 = arith.constant 0 : index
    %23 = vector.load %arg2[%c0_5, %c0_6] : memref<128x384xbf16, #tpu.memory_space<vmem>>, vector<128x384xbf16>
    %cst = arith.constant dense<0.000000e+00> : vector<128x384xf32>
    %24 = tpu.matmul %22, %23, %cst {dimension_numbers = #tpu.dot_dimension_numbers<[1], [0], [0], [1], [0, 0, 1, 1], [], []>} : vector<128x128xbf16>, vector<128x384xbf16>, vector<128x384xf32> -> vector<128x384xf32>
    %25 = vector.extract_strided_slice %24 {offsets = [0, 128], sizes = [128, 128], strides = [1, 1]} : vector<128x384xf32> to vector<128x128xf32>
    %c0_7 = arith.constant 0 : index
    %c0_8 = arith.constant 0 : index
    %26 = vector.load %arg3[%c0_7, %c0_8] : memref<1x128xf32, #tpu.memory_space<vmem>>, vector<1x128xf32>
    %27 = vector.broadcast %26 : vector<1x128xf32> to vector<128x128xf32>
    %28 = arith.addf %25, %27 : vector<128x128xf32>
    %29 = vector.extract_strided_slice %24 {offsets = [0, 0], sizes = [128, 128], strides = [1, 1]} : vector<128x384xf32> to vector<128x128xf32>
    %c1_i32_9 = arith.constant 1 : i32
    %30 = tpu.dynamic_rotate %29 by %c1_i32_9 dim 0 : vector<128x128xf32>, i32 -> vector<128x128xf32>
    %cst_10 = arith.constant 0.000000e+00 : f32
    %31 = vector.broadcast %cst_10 : f32 to vector<128x128xf32>
    %32 = arith.select %18, %30, %31 : vector<128x128xi1>, vector<128x128xf32>
    %33 = arith.addf %28, %32 : vector<128x128xf32>
    %34 = vector.extract_strided_slice %24 {offsets = [0, 256], sizes = [128, 128], strides = [1, 1]} : vector<128x384xf32> to vector<128x128xf32>
    %c127_i32 = arith.constant 127 : i32
    %35 = tpu.dynamic_rotate %34 by %c127_i32 dim 0 : vector<128x128xf32>, i32 -> vector<128x128xf32>
    %cst_11 = arith.constant 0.000000e+00 : f32
    %36 = vector.broadcast %cst_11 : f32 to vector<128x128xf32>
    %37 = arith.select %20, %35, %36 : vector<128x128xi1>, vector<128x128xf32>
    %38 = arith.addf %33, %37 : vector<128x128xf32>
    %cst_12 = arith.constant 0.000000e+00 : f32
    %39 = vector.broadcast %cst_12 : f32 to vector<128x128xf32>
    %40 = arith.maximumf %38, %39 : vector<128x128xf32>
    %41 = arith.truncf %40 : vector<128x128xf32> to vector<128x128xbf16>
    %c0_13 = arith.constant 0 : index
    %c0_14 = arith.constant 0 : index
    %42 = vector.load %arg7[%c0_13, %c0_14] : memref<128x128xbf16, #tpu.memory_space<vmem>>, vector<128x128xbf16>
    tpu.vector_store %arg7[%c0_13, %c0_14], %41 {strides = array<i32>} : memref<128x128xbf16, #tpu.memory_space<vmem>>, vector<128x128xbf16>,
    %c0_15 = arith.constant 0 : index
    %c0_16 = arith.constant 0 : index
    %43 = vector.load %arg7[%c0_15, %c0_16] : memref<128x128xbf16, #tpu.memory_space<vmem>>, vector<128x128xbf16>
    %c0_17 = arith.constant 0 : index
    %c0_18 = arith.constant 0 : index
    %44 = vector.load %arg4[%c0_17, %c0_18] : memref<128x384xbf16, #tpu.memory_space<vmem>>, vector<128x384xbf16>
    %cst_19 = arith.constant dense<0.000000e+00> : vector<128x384xf32>
    %45 = tpu.matmul %43, %44, %cst_19 {dimension_numbers = #tpu.dot_dimension_numbers<[1], [0], [0], [1], [0, 0, 1, 1], [], []>} : vector<128x128xbf16>, vector<128x384xbf16>, vector<128x384xf32> -> vector<128x384xf32>
    %46 = vector.extract_strided_slice %45 {offsets = [0, 128], sizes = [128, 128], strides = [1, 1]} : vector<128x384xf32> to vector<128x128xf32>
    %c0_20 = arith.constant 0 : index
    %c0_21 = arith.constant 0 : index
    %47 = vector.load %arg5[%c0_20, %c0_21] : memref<1x128xf32, #tpu.memory_space<vmem>>, vector<1x128xf32>
    %48 = vector.broadcast %47 : vector<1x128xf32> to vector<128x128xf32>
    %49 = arith.addf %46, %48 : vector<128x128xf32>
    %50 = vector.extract_strided_slice %45 {offsets = [0, 0], sizes = [128, 128], strides = [1, 1]} : vector<128x384xf32> to vector<128x128xf32>
    %c1_i32_22 = arith.constant 1 : i32
    %51 = tpu.dynamic_rotate %50 by %c1_i32_22 dim 0 : vector<128x128xf32>, i32 -> vector<128x128xf32>
    %cst_23 = arith.constant 0.000000e+00 : f32
    %52 = vector.broadcast %cst_23 : f32 to vector<128x128xf32>
    %53 = arith.select %18, %51, %52 : vector<128x128xi1>, vector<128x128xf32>
    %54 = arith.addf %49, %53 : vector<128x128xf32>
    %55 = vector.extract_strided_slice %45 {offsets = [0, 256], sizes = [128, 128], strides = [1, 1]} : vector<128x384xf32> to vector<128x128xf32>
    %c127_i32_24 = arith.constant 127 : i32
    %56 = tpu.dynamic_rotate %55 by %c127_i32_24 dim 0 : vector<128x128xf32>, i32 -> vector<128x128xf32>
    %cst_25 = arith.constant 0.000000e+00 : f32
    %57 = vector.broadcast %cst_25 : f32 to vector<128x128xf32>
    %58 = arith.select %20, %56, %57 : vector<128x128xi1>, vector<128x128xf32>
    %59 = arith.addf %54, %58 : vector<128x128xf32>
    %60 = arith.addf %59, %21 : vector<128x128xf32>
    %cst_26 = arith.constant 0.000000e+00 : f32
    %61 = vector.broadcast %cst_26 : f32 to vector<128x128xf32>
    %62 = arith.maximumf %60, %61 : vector<128x128xf32>
    %c0_27 = arith.constant 0 : index
    %c0_28 = arith.constant 0 : index
    %63 = vector.load %arg6[%c0_27, %c0_28] : memref<128x128xf32, #tpu.memory_space<vmem>>, vector<128x128xf32>
    tpu.vector_store %arg6[%c0_27, %c0_28], %62 {strides = array<i32>} : memref<128x128xf32, #tpu.memory_space<vmem>>, vector<128x128xf32>,
    return
  }
  func.func @transform_0(%arg0: i32) -> (i32, i32) {
    %c0_i32 = arith.constant 0 : i32
    %c0_i32_0 = arith.constant 0 : i32
    return %arg0, %c0_i32 : i32, i32
  }
  func.func @transform_1(%arg0: i32) -> (i32, i32) {
    %c0_i32 = arith.constant 0 : i32
    %c0_i32_0 = arith.constant 0 : i32
    %c0_i32_1 = arith.constant 0 : i32
    return %c0_i32, %c0_i32_0 : i32, i32
  }
  func.func @transform_2(%arg0: i32) -> (i32, i32) {
    %c0_i32 = arith.constant 0 : i32
    %c0_i32_0 = arith.constant 0 : i32
    %c0_i32_1 = arith.constant 0 : i32
    return %c0_i32, %c0_i32_0 : i32, i32
  }
  func.func @transform_3(%arg0: i32) -> (i32, i32) {
    %c0_i32 = arith.constant 0 : i32
    %c0_i32_0 = arith.constant 0 : i32
    %c0_i32_1 = arith.constant 0 : i32
    return %c0_i32, %c0_i32_0 : i32, i32
  }
  func.func @transform_4(%arg0: i32) -> (i32, i32) {
    %c0_i32 = arith.constant 0 : i32
    %c0_i32_0 = arith.constant 0 : i32
    %c0_i32_1 = arith.constant 0 : i32
    return %c0_i32, %c0_i32_0 : i32, i32
  }
  func.func @transform_5(%arg0: i32) -> (i32, i32) {
    %c0_i32 = arith.constant 0 : i32
    %c0_i32_0 = arith.constant 0 : i32
    return %arg0, %c0_i32 : i32, i32
  }
}

</mosaic_0001>

<bundles_post_ra>
// kernel: tile.22
= control target key start
LH: loop header
LB: loop body
LE: loop exit
PB: predicated region body
PF: predicated region fallthrough
CT: control target
= control target key end

     0   :  { %s28_s0 = inlined_call_operand.vmem [shape: f32[8], index: 0, kind: input, shape index: {}]   ;;  %s29_s1 = inlined_call_operand.vmem [shape: f32[16,8], index: 1, kind: output, shape index: {}]  }
   0x1   :  { %v4_v0 = vld [vmem:[%s28_s0] ss:$0 sm:$0xff] }
   0x2   :  { %5 = vst [vmem:[%s29_s1] sm:$0xff] %v4_v0  ;;  %8 = vst [vmem:[%s29_s1 + $0x8] sm:$0xff] %v4_v0 }

// kernel: mul.13
= control target key start
LH: loop header
LB: loop body
LE: loop exit
PB: predicated region body
PF: predicated region fallthrough
CT: control target
= control target key end

     0   :  { %s131_s10 = smov 120   ;;  %s132_s11 = smov 104   ;;  %vm3_vm0 = vcmask 64512   ;;  %vm9_vm1 = vcmask 1048512   ;;  %vm15_vm2 = vcmask 982912   ;;  %vm21_vm3 = vcmask 917312   ;;  %s207_s0 = inlined_call_operand.vmem [shape: f32[16,8], index: 0, kind: input, shape index: {}]   ;;  %s208_s1 = inlined_call_operand.vmem [shape: f32[128], index: 1, kind: output, shape index: {}]  }
   0x1   :  { %v101_v0 = vld [vmem:[%s207_s0 + $0xf] sm:$0x1]   ;;  %v103_v1 = vld [vmem:[%s207_s0 + $0xd] sm:$0x1]   ;;  %v102_v2 = vld [vmem:[%s207_s0 + $0xe] sm:$0x1]  }
   0x2   :  { %7 = vrot.lane.b32.xlu0 %v101_v0, %s131_s10  ;;  %19 = vrot.lane.b32.xlu1 %v103_v1, %s132_s11  ;;  %v104_v3 = vld [vmem:[%s207_s0 + $0xc] sm:$0x1]   ;;  %s133_s16 = smov 112   ;;  %s134_s17 = smov 96   ;;  %v105_v4 = vld [vmem:[%s207_s0 + $0xb] sm:$0x1]  }
   0x3   :  { %v106_v5 = vld [vmem:[%s207_s0 + $0xa] sm:$0x1]   ;;  %v2_v6 = vld [vmem:[%s207_s0] sm:$0x1]   ;;  %s135_s24 = smov 88   ;;  %s136_s25 = smov 80  }
   0x4   :  { %4 = vst.msk [vmem:[#allocation0] sm:$0x1] %vm3_vm0, %v2_v6   ;;  %v107_v7 = vld [vmem:[%s207_s0 + $0x9] sm:$0x1]   ;;  %v108_v8 = vld [vmem:[%s207_s0 + $0x8] sm:$0x1]  }
   0x5   :  { %s137_s30 = smov 72   ;;  %s138_s2 = smov 64   ;;  %v109_v9 = vld [vmem:[%s207_s0 + $0x7] sm:$0x1]   ;;  %v110_v10 = vld [vmem:[%s207_s0 + $0x6] sm:$0x1]  }
   0x6   :  { %13 = vrot.lane.b32.xlu0 %v102_v2, %s133_s16  ;;  %25 = vrot.lane.b32.xlu1 %v104_v3, %s134_s17  ;;  %s139_s7 = smov 56   ;;  %s140_s8 = smov 48   ;;  %v111_v11 = vld [vmem:[%s207_s0 + $0x5] sm:$0x1]   ;;  %v112_v12 = vld [vmem:[%s207_s0 + $0x4] sm:$0x1]  }
   0x7   :  { %s141_s13 = smov 40   ;;  %s142_s14 = smov 32   ;;  %v113_v13 = vld [vmem:[%s207_s0 + $0x3] sm:$0x1]   ;;  %v114_v14 = vld [vmem:[%s207_s0 + $0x2] sm:$0x1]  }
   0x8   :  { %s143_s19 = smov 24   ;;  %s144_s20 = smov 16   ;;  %v115_v15 = vld [vmem:[%s207_s0 + $0x1] sm:$0x1]   ;;  %vm27_vm4 = vcmask 851712   ;;  %vm33_vm5 = vcmask 786112  }
   0x9   :  { %s145_s0 = smov 8   ;;  %vm39_vm6 = vcmask 720512   ;;  %vm45_vm7 = vcmask 654912   ;;  %vm51_vm8 = vcmask 589312   ;;  %vm57_vm9 = vcmask 523712  }
   0xa   :  { %31 = vrot.lane.b32.xlu0 %v105_v4, %s135_s24  ;;  %37 = vrot.lane.b32.xlu1 %v106_v5, %s136_s25  ;;  %vm63_vm10 = vcmask 458112   ;;  %vm69_vm11 = vcmask 392512   ;;  %vm75_vm12 = vcmask 326912   ;;  %vm81_vm13 = vcmask 261312  }
   0xb   :  { %vm87_vm14 = vcmask 195712   ;;  %vm93_vm15 = vcmask 130112  }
   0xe   :  { %43 = vrot.lane.b32.xlu0 %v107_v7, %s137_s30  ;;  %49 = vrot.lane.b32.xlu1 %v108_v8, %s138_s2 }
  0x12   :  { %55 = vrot.lane.b32.xlu0 %v109_v9, %s139_s7  ;;  %61 = vrot.lane.b32.xlu1 %v110_v10, %s140_s8 }
  0x16   :  { %67 = vrot.lane.b32.xlu0 %v111_v11, %s141_s13  ;;  %73 = vrot.lane.b32.xlu1 %v112_v12, %s142_s14 }
  0x1a   :  { %79 = vrot.lane.b32.xlu0 %v113_v13, %s143_s19  ;;  %85 = vrot.lane.b32.xlu1 %v114_v14, %s144_s20 }
  0x1e   :  { %91 = vrot.lane.b32.xlu0 %v115_v15, %s145_s0 }
  0x74   :  { %v8_v16 = vpop.permute.xlu0 %7   ;;  %v20_v17 = vpop.permute.xlu1 %19  }
  0x75   :  { %10 = vst.msk [vmem:[#allocation0] sm:$0x1] %vm9_vm1, %v8_v16  }
  0x78   :  { %v14_v18 = vpop.permute.xlu0 %13   ;;  %v26_v19 = vpop.permute.xlu1 %25  }
  0x79   :  { %16 = vst.msk [vmem:[#allocation0] sm:$0x1] %vm15_vm2, %v14_v18  }
  0x7a   :  { %22 = vst.msk [vmem:[#allocation0] sm:$0x1] %vm21_vm3, %v20_v17  }
  0x7b   :  { %28 = vst.msk [vmem:[#allocation0] sm:$0x1] %vm27_vm4, %v26_v19  }
  0x7c   :  { %v32_v20 = vpop.permute.xlu0 %31   ;;  %v38_v21 = vpop.permute.xlu1 %37  }
  0x7d   :  { %34 = vst.msk [vmem:[#allocation0] sm:$0x1] %vm33_vm5, %v32_v20  }
  0x7e   :  { %40 = vst.msk [vmem:[#allocation0] sm:$0x1] %vm39_vm6, %v38_v21  }
  0x80   :  { %v44_v22 = vpop.permute.xlu0 %43   ;;  %v50_v23 = vpop.permute.xlu1 %49  }
  0x81   :  { %46 = vst.msk [vmem:[#allocation0] sm:$0x1] %vm45_vm7, %v44_v22  }
  0x82   :  { %52 = vst.msk [vmem:[#allocation0] sm:$0x1] %vm51_vm8, %v50_v23  }
  0x84   :  { %v56_v24 = vpop.permute.xlu0 %55   ;;  %v62_v25 = vpop.permute.xlu1 %61  }
  0x85   :  { %58 = vst.msk [vmem:[#allocation0] sm:$0x1] %vm57_vm9, %v56_v24  }
  0x86   :  { %64 = vst.msk [vmem:[#allocation0] sm:$0x1] %vm63_vm10, %v62_v25  }
  0x88   :  { %v68_v26 = vpop.permute.xlu0 %67   ;;  %v74_v27 = vpop.permute.xlu1 %73  }
  0x89   :  { %70 = vst.msk [vmem:[#allocation0] sm:$0x1] %vm69_vm11, %v68_v26  }
  0x8a   :  { %76 = vst.msk [vmem:[#allocation0] sm:$0x1] %vm75_vm12, %v74_v27  }
  0x8c   :  { %v80_v28 = vpop.permute.xlu0 %79   ;;  %v86_v29 = vpop.permute.xlu1 %85  }
  0x8d   :  { %82 = vst.msk [vmem:[#allocation0] sm:$0x1] %vm81_vm13, %v80_v28  }
  0x8e   :  { %88 = vst.msk [vmem:[#allocation0] sm:$0x1] %vm87_vm14, %v86_v29  }
  0x90   :  { %v92_v30 = vpop.permute.xlu0 %91  }
  0x91   :  { %94 = vst.msk [vmem:[#allocation0] sm:$0x1] %vm93_vm15, %v92_v30  }
  0x98   :  { %v98_v31 = vld [vmem:[#allocation0] sm:$0x1] }
  0x99   :  { %100 = vst [vmem:[%s208_s1] sm:$0x1] %v98_v31 }

// kernel: tile.27
= control target key start
LH: loop header
LB: loop body
LE: loop exit
PB: predicated region body
PF: predicated region fallthrough
CT: control target
= control target key end

     0   :  { %s131_s10 = smov 120   ;;  %s132_s11 = smov 104   ;;  %vm3_vm0 = vcmask 64512   ;;  %vm9_vm1 = vcmask 1048512   ;;  %vm15_vm2 = vcmask 982912   ;;  %vm21_vm3 = vcmask 917312   ;;  %s207_s0 = inlined_call_operand.vmem [shape: f32[16,8], index: 0, kind: input, shape index: {}]   ;;  %s208_s1 = inlined_call_operand.vmem [shape: f32[1,128], index: 1, kind: output, shape index: {}]  }
   0x1   :  { %v101_v0 = vld [vmem:[%s207_s0 + $0xf] sm:$0x1]   ;;  %v103_v1 = vld [vmem:[%s207_s0 + $0xd] sm:$0x1]   ;;  %v102_v2 = vld [vmem:[%s207_s0 + $0xe] sm:$0x1]  }
   0x2   :  { %7 = vrot.lane.b32.xlu0 %v101_v0, %s131_s10  ;;  %19 = vrot.lane.b32.xlu1 %v103_v1, %s132_s11  ;;  %v104_v3 = vld [vmem:[%s207_s0 + $0xc] sm:$0x1]   ;;  %s133_s16 = smov 112   ;;  %s134_s17 = smov 96   ;;  %v105_v4 = vld [vmem:[%s207_s0 + $0xb] sm:$0x1]  }
   0x3   :  { %v106_v5 = vld [vmem:[%s207_s0 + $0xa] sm:$0x1]   ;;  %v2_v6 = vld [vmem:[%s207_s0] sm:$0x1]   ;;  %s135_s24 = smov 88   ;;  %s136_s25 = smov 80  }
   0x4   :  { %4 = vst.msk [vmem:[#allocation0] sm:$0x1] %vm3_vm0, %v2_v6   ;;  %v107_v7 = vld [vmem:[%s207_s0 + $0x9] sm:$0x1]   ;;  %v108_v8 = vld [vmem:[%s207_s0 + $0x8] sm:$0x1]  }
   0x5   :  { %s137_s30 = smov 72   ;;  %s138_s2 = smov 64   ;;  %v109_v9 = vld [vmem:[%s207_s0 + $0x7] sm:$0x1]   ;;  %v110_v10 = vld [vmem:[%s207_s0 + $0x6] sm:$0x1]  }
   0x6   :  { %13 = vrot.lane.b32.xlu0 %v102_v2, %s133_s16  ;;  %25 = vrot.lane.b32.xlu1 %v104_v3, %s134_s17  ;;  %s139_s7 = smov 56   ;;  %s140_s8 = smov 48   ;;  %v111_v11 = vld [vmem:[%s207_s0 + $0x5] sm:$0x1]   ;;  %v112_v12 = vld [vmem:[%s207_s0 + $0x4] sm:$0x1]  }
   0x7   :  { %s141_s13 = smov 40   ;;  %s142_s14 = smov 32   ;;  %v113_v13 = vld [vmem:[%s207_s0 + $0x3] sm:$0x1]   ;;  %v114_v14 = vld [vmem:[%s207_s0 + $0x2] sm:$0x1]  }
   0x8   :  { %s143_s19 = smov 24   ;;  %s144_s20 = smov 16   ;;  %v115_v15 = vld [vmem:[%s207_s0 + $0x1] sm:$0x1]   ;;  %vm27_vm4 = vcmask 851712   ;;  %vm33_vm5 = vcmask 786112  }
   0x9   :  { %s145_s0 = smov 8   ;;  %vm39_vm6 = vcmask 720512   ;;  %vm45_vm7 = vcmask 654912   ;;  %vm51_vm8 = vcmask 589312   ;;  %vm57_vm9 = vcmask 523712  }
   0xa   :  { %31 = vrot.lane.b32.xlu0 %v105_v4, %s135_s24  ;;  %37 = vrot.lane.b32.xlu1 %v106_v5, %s136_s25  ;;  %vm63_vm10 = vcmask 458112   ;;  %vm69_vm11 = vcmask 392512   ;;  %vm75_vm12 = vcmask 326912   ;;  %vm81_vm13 = vcmask 261312  }
   0xb   :  { %vm87_vm14 = vcmask 195712   ;;  %vm93_vm15 = vcmask 130112  }
   0xe   :  { %43 = vrot.lane.b32.xlu0 %v107_v7, %s137_s30  ;;  %49 = vrot.lane.b32.xlu1 %v108_v8, %s138_s2 }
  0x12   :  { %55 = vrot.lane.b32.xlu0 %v109_v9, %s139_s7  ;;  %61 = vrot.lane.b32.xlu1 %v110_v10, %s140_s8 }
  0x16   :  { %67 = vrot.lane.b32.xlu0 %v111_v11, %s141_s13  ;;  %73 = vrot.lane.b32.xlu1 %v112_v12, %s142_s14 }
  0x1a   :  { %79 = vrot.lane.b32.xlu0 %v113_v13, %s143_s19  ;;  %85 = vrot.lane.b32.xlu1 %v114_v14, %s144_s20 }
  0x1e   :  { %91 = vrot.lane.b32.xlu0 %v115_v15, %s145_s0 }
  0x74   :  { %v8_v16 = vpop.permute.xlu0 %7   ;;  %v20_v17 = vpop.permute.xlu1 %19  }
  0x75   :  { %10 = vst.msk [vmem:[#allocation0] sm:$0x1] %vm9_vm1, %v8_v16  }
  0x78   :  { %v14_v18 = vpop.permute.xlu0 %13   ;;  %v26_v19 = vpop.permute.xlu1 %25  }
  0x79   :  { %16 = vst.msk [vmem:[#allocation0] sm:$0x1] %vm15_vm2, %v14_v18  }
  0x7a   :  { %22 = vst.msk [vmem:[#allocation0] sm:$0x1] %vm21_vm3, %v20_v17  }
  0x7b   :  { %28 = vst.msk [vmem:[#allocation0] sm:$0x1] %vm27_vm4, %v26_v19  }
  0x7c   :  { %v32_v20 = vpop.permute.xlu0 %31   ;;  %v38_v21 = vpop.permute.xlu1 %37  }
  0x7d   :  { %34 = vst.msk [vmem:[#allocation0] sm:$0x1] %vm33_vm5, %v32_v20  }
  0x7e   :  { %40 = vst.msk [vmem:[#allocation0] sm:$0x1] %vm39_vm6, %v38_v21  }
  0x80   :  { %v44_v22 = vpop.permute.xlu0 %43   ;;  %v50_v23 = vpop.permute.xlu1 %49  }
  0x81   :  { %46 = vst.msk [vmem:[#allocation0] sm:$0x1] %vm45_vm7, %v44_v22  }
  0x82   :  { %52 = vst.msk [vmem:[#allocation0] sm:$0x1] %vm51_vm8, %v50_v23  }
  0x84   :  { %v56_v24 = vpop.permute.xlu0 %55   ;;  %v62_v25 = vpop.permute.xlu1 %61  }
  0x85   :  { %58 = vst.msk [vmem:[#allocation0] sm:$0x1] %vm57_vm9, %v56_v24  }
  0x86   :  { %64 = vst.msk [vmem:[#allocation0] sm:$0x1] %vm63_vm10, %v62_v25  }
  0x88   :  { %v68_v26 = vpop.permute.xlu0 %67   ;;  %v74_v27 = vpop.permute.xlu1 %73  }
  0x89   :  { %70 = vst.msk [vmem:[#allocation0] sm:$0x1] %vm69_vm11, %v68_v26  }
  0x8a   :  { %76 = vst.msk [vmem:[#allocation0] sm:$0x1] %vm75_vm12, %v74_v27  }
  0x8c   :  { %v80_v28 = vpop.permute.xlu0 %79   ;;  %v86_v29 = vpop.permute.xlu1 %85  }
  0x8d   :  { %82 = vst.msk [vmem:[#allocation0] sm:$0x1] %vm81_vm13, %v80_v28  }
  0x8e   :  { %88 = vst.msk [vmem:[#allocation0] sm:$0x1] %vm87_vm14, %v86_v29  }
  0x90   :  { %v92_v30 = vpop.permute.xlu0 %91  }
  0x91   :  { %94 = vst.msk [vmem:[#allocation0] sm:$0x1] %vm93_vm15, %v92_v30  }
  0x98   :  { %v98_v31 = vld [vmem:[#allocation0] sm:$0x1] }
  0x99   :  { %100 = vst [vmem:[%s208_s1] sm:$0x1] %v98_v31 }

// kernel: res_basic_block.1
= control target key start
LH: loop header
LB: loop body
LE: loop exit
PB: predicated region body
PF: predicated region fallthrough
CT: control target
= control target key end

     0   :  { %s1959_s18 = smov 0   ;;  %s2644_s0 = inlined_call_operand.vmem [shape: f32[256,128], index: 0, kind: input, shape index: {}]   ;;  %s2645_s1 = inlined_call_operand.vmem [shape: bf16[128,384], index: 1, kind: input, shape index: {}]   ;;  %s2646_s2 = inlined_call_operand.vmem [shape: f32[1,128], index: 2, kind: input, shape index: {}]   ;;  %s2647_s3 = inlined_call_operand.vmem [shape: bf16[128,384], index: 3, kind: input, shape index: {}]   ;;  %s2648_s4 = inlined_call_operand.vmem [shape: f32[1,128], index: 4, kind: input, shape index: {}]   ;;  %s2649_s5 = inlined_call_operand.vmem [shape: f32[256,128], index: 5, kind: output, shape index: {}]  }
   0x1 LB: > { %s1682_s19 = sadd.s32 4294967295, %s1926_s18   ;;  %p1686_p0 = scmp.ge.s32.totalorder %s1926_s18, 1  ;;  %s1926_s18 = sphi %s1959_s18, %s15_s18  }
   0x2   : > { %p188_p1 = scmp.lt.s32.totalorder %s1926_s18, 3 }
   0x4   : > { %p189_p2 = pnand %p1686_p0, %p188_p1 }
   0x5   : > { %v1848_v0 = vld [vmem:[%s2645_s1 + $0x4] ss:$12 sps:$4 sm:$0xff] (!%p189_p2)   ;;  %s1687_s22 = sshll.u32 (!%p189_p2), %s1682_s19, 4  ;;  %v1850_v1 = vld [vmem:[%s2645_s1 + $0x8] ss:$12 sps:$4 sm:$0xff] (!%p189_p2)   ;;  %v1928_v2 = vmov (!%p189_p2), 0  }
   0x6   : > { %192 = sbr.rel (%p189_p2) target bundleno = 603 (0x25b), region = 40  ;;  %686 = vmatprep.mubr.bf16.mxu0 (!%p189_p2), %v1928_v2  ;;  %654 = vmatprep.subr.bf16.mxu0 (!%p189_p2), %v1848_v0  ;;  %v1851_v3 = vld [vmem:[%s2645_s1] ss:$12 sps:$4 sm:$0xff] (!%p189_p2)   ;;  %p217_p3 = scmp.lt.s32.totalorder (!%p189_p2), %s1687_s22, 31  ;;  %v1852_v4 = vld [vmem:[%s2645_s1 + $0x1c] ss:$12 sps:$4 sm:$0xff] (!%p189_p2)  }
   0x7   : > { %1775 = vmatprep.subr.bf16.mxu1 (!%p189_p2), %v1850_v1  ;;  %655 = vmatpush1.bf16.msra.mxu0 (!%p189_p2), %v1851_v3  ;;  %v1854_v5 = vld [vmem:[%s2645_s1 + $0x20] ss:$12 sps:$4 sm:$0xff] (!%p189_p2)   ;;  %v1855_v6 = vld [vmem:[%s2645_s1 + $0x18] ss:$12 sps:$4 sm:$0xff] (!%p189_p2)   ;;  %v1859_v9 = vld [vmem:[%s2645_s1 + $0x30] ss:$12 sps:$4 sm:$0xff] (!%p189_p2)  }
   0x8   : > { %1776 = vmatpush3.bf16.msra.mxu1 (!%p189_p2), %v1850_v1  ;;  %656 = vmatprep.subr.bf16.mxu0 (!%p189_p2), %v1852_v4  ;;  %v1856_v7 = vld [vmem:[%s2645_s1 + $0x34] ss:$12 sps:$4 sm:$0xff] (!%p189_p2)   ;;  %v1858_v8 = vld [vmem:[%s2645_s1 + $0x38] ss:$12 sps:$4 sm:$0xff] (!%p189_p2)   ;;  %v1862_v11 = vld [vmem:[%s2645_s1 + $0x50] ss:$12 sps:$4 sm:$0xff] (!%p189_p2)  }
   0x9   : > { %1777 = vmatprep.subr.bf16.mxu1 (!%p189_p2), %v1854_v5  ;;  %v1860_v10 = vld [vmem:[%s2645_s1 + $0x4c] ss:$12 sps:$4 sm:$0xff] (!%p189_p2)   ;;  %v1863_v12 = vld [vmem:[%s2645_s1 + $0x48] ss:$12 sps:$4 sm:$0xff] (!%p189_p2)   ;;  %v1864_v13 = vld [vmem:[%s2645_s1 + $0x64] ss:$12 sps:$4 sm:$0xff] (!%p189_p2)  }
   0xa   : > { %v1866_v14 = vld [vmem:[%s2645_s1 + $0x68] ss:$12 sps:$4 sm:$0xff] (!%p189_p2)   ;;  %v1867_v15 = vld [vmem:[%s2645_s1 + $0x60] ss:$12 sps:$4 sm:$0xff] (!%p189_p2)   ;;  %v1871_v20 = vld [vmem:[%s2645_s1 + $0x78] ss:$12 sps:$4 sm:$0xff] (!%p189_p2)  }
   0xb   : > { %657 = vmatpush1.bf16.msra.mxu0 (!%p189_p2), %v1855_v6  ;;  %v1868_v16 = vld [vmem:[%s2645_s1 + $0x7c] ss:$12 sps:$4 sm:$0xff] (!%p189_p2)   ;;  %v1870_v17 = vld [vmem:[%s2645_s1 + $0x80] ss:$12 sps:$4 sm:$0xff] (!%p189_p2)   ;;  %v1874_v23 = vld [vmem:[%s2645_s1 + $0x98] ss:$12 sps:$4 sm:$0xff] (!%p189_p2)  }
   0xc   : > { %1778 = vmatpush3.bf16.msra.mxu1 (!%p189_p2), %v1854_v5  ;;  %658 = vmatprep.subr.bf16.mxu0 (!%p189_p2), %v1856_v7  ;;  %v1872_v22 = vld [vmem:[%s2645_s1 + $0x94] ss:$12 sps:$4 sm:$0xff] (!%p189_p2)   ;;  %v1875_v24 = vld [vmem:[%s2645_s1 + $0x90] ss:$12 sps:$4 sm:$0xff] (!%p189_p2)   ;;  %v1876_v25 = vld [vmem:[%s2645_s1 + $0xac] ss:$12 sps:$4 sm:$0xff] (!%p189_p2)  }
   0xd   : > { %s2706_s22 = smov (!%p217_p3, %s1687_s22), 31  ;;  %1779 = vmatprep.subr.bf16.mxu1 %v1858_v8  ;;  %v1878_v26 = vld [vmem:[%s2645_s1 + $0xb0] ss:$12 sps:$4 sm:$0xff]   ;;  %v1879_v27 = vld [vmem:[%s2645_s1 + $0xa8] ss:$12 sps:$4 sm:$0xff]  }
   0xe   : > { %s1688_s21 = sshll.u32 %s2706_s22, 3  ;;  %v1882_v49 = vld [vmem:[%s2647_s3 + $0x4] ss:$12 sps:$4 sm:$0xff]   ;;  %v1880_v50 = vld [vmem:[%s2647_s3] ss:$12 sps:$4 sm:$0xff]  }
   0xf   : > { %659 = vmatpush1.bf16.msra.mxu0 %v1859_v9  ;;  %s2021_s6 = scalar_lea.vmem %s2644_s0, %s1688_s21  ;;  %v1883_v51 = vld [vmem:[%s2647_s3 + $0x8] ss:$12 sps:$4 sm:$0xff]   ;;  %v1884_v53 = vld [vmem:[%s2647_s3 + $0x18] ss:$12 sps:$4 sm:$0xff]   ;;  %v1887_v54 = vld [vmem:[%s2647_s3 + $0x20] ss:$12 sps:$4 sm:$0xff]   ;;  %s2486_s16 = scalar_lea.vmem %s2649_s5, %s1688_s21 }
  0x10   : > { %1780 = vmatpush3.bf16.msra.mxu1 %v1858_v8  ;;  %660 = vmatprep.subr.bf16.mxu0 %v1860_v10  ;;  %v470_v18 = vld [vmem:[%s2021_s6] sm:$0xff]  ;;  %v2031_v19 = vld [vmem:[%s2021_s6 + $0x8] sm:$0xff]  ;;  %v2056_v28 = vld [vmem:[%s2021_s6 + $0x10] sm:$0xff]  ;;  %v229_v10 = vlaneseq }
  0x11   : > { %1781 = vmatprep.subr.bf16.mxu1 %v1862_v11  ;;  %v486_v21 = vpack.c.bf16 %v2031_v19, %v470_v18  ;;  %v2059_v29 = vld [vmem:[%s2021_s6 + $0x18] sm:$0xff]  ;;  %v2062_v30 = vld [vmem:[%s2021_s6 + $0x20] sm:$0xff]  ;;  %v2065_v31 = vld [vmem:[%s2021_s6 + $0x28] sm:$0xff] }
  0x12   : > { %v487_v32 = vpack.c.bf16 %v2059_v29, %v2056_v28  ;;  %v488_v33 = vpack.c.bf16 %v2065_v31, %v2062_v30  ;;  %v2073_v34 = vld [vmem:[%s2021_s6 + $0x30] sm:$0xff]  ;;  %v2076_v35 = vld [vmem:[%s2021_s6 + $0x38] sm:$0xff]  ;;  %v2079_v36 = vld [vmem:[%s2021_s6 + $0x40] sm:$0xff] }
  0x13   : > { %661 = vmatpush1.bf16.msra.mxu0 %v1863_v12  ;;  %1791 = vmatprep.mubr.bf16.mxu1 %v486_v21  ;;  %v479_v37 = vld [vmem:[%s2021_s6 + $0x48] sm:$0xff]  ;;  %v489_v38 = vpack.c.bf16 %v2076_v35, %v2073_v34  ;;  %v480_v40 = vld [vmem:[%s2021_s6 + $0x50] sm:$0xff]  ;;  %v481_v41 = vld [vmem:[%s2021_s6 + $0x58] sm:$0xff] }
  0x14   : > { %1782 = vmatpush3.bf16.msra.mxu1 %v1862_v11  ;;  %662 = vmatprep.subr.bf16.mxu0 %v1864_v13  ;;  %v490_v39 = vpack.c.bf16 %v479_v37, %v2079_v36  ;;  %v482_v42 = vld [vmem:[%s2021_s6 + $0x60] sm:$0xff]  ;;  %v483_v43 = vld [vmem:[%s2021_s6 + $0x68] sm:$0xff]  ;;  %v491_v44 = vpack.c.bf16 %v481_v41, %v480_v40  ;;  %v484_v46 = vld [vmem:[%s2021_s6 + $0x70] sm:$0xff]  ;;  %v2170_v11 = vshrl.u32 %v229_v10, 7 }
  0x15   : > { %1783 = vmatprep.subr.bf16.mxu1 %v1866_v14  ;;  %v492_v45 = vpack.c.bf16 %v483_v43, %v482_v42  ;;  %v485_v47 = vld [vmem:[%s2021_s6 + $0x78] sm:$0xff]  ;;  %v1890_v55 = vld [vmem:[%s2647_s3 + $0x34] ss:$12 sps:$4 sm:$0xff]   ;;  %v1898_v61 = vld [vmem:[%s2647_s3 + $0x64] ss:$12 sps:$4 sm:$0xff]  }
  0x16   : > { %v493_v48 = vpack.c.bf16 %v485_v47, %v484_v46  ;;  %v1886_v52 = vld [vmem:[%s2647_s3 + $0x1c] ss:$12 sps:$4 sm:$0xff]   ;;  %v1891_v57 = vld [vmem:[%s2647_s3 + $0x38] ss:$12 sps:$4 sm:$0xff]   ;;  %v1896_v62 = vld [vmem:[%s2647_s3 + $0x60] ss:$12 sps:$4 sm:$0xff]  }
  0x17   : > { %663 = vmatpush1.bf16.msra.mxu0 %v1867_v15  ;;  %v1888_v56 = vld [vmem:[%s2647_s3 + $0x30] ss:$12 sps:$4 sm:$0xff]   ;;  %v1894_v58 = vld [vmem:[%s2647_s3 + $0x4c] ss:$12 sps:$4 sm:$0xff]   ;;  %v1892_v59 = vld [vmem:[%s2647_s3 + $0x48] ss:$12 sps:$4 sm:$0xff]  }
  0x18   : > { %1784 = vmatpush3.bf16.msra.mxu1 %v1866_v14  ;;  %664 = vmatprep.subr.bf16.mxu0 %v1868_v16  ;;  %v1895_v60 = vld [vmem:[%s2647_s3 + $0x50] ss:$12 sps:$4 sm:$0xff]   ;;  %v1899_v63 = vld [vmem:[%s2647_s3 + $0x68] ss:$12 sps:$4 sm:$0xff]   ;;  %v1900_v1 = vld [vmem:[%s2647_s3 + $0x78] ss:$12 sps:$4 sm:$0xff]  }
  0x19   : > { %1785 = vmatprep.subr.bf16.mxu1 %v1870_v17  ;;  %v1902_v0 = vld [vmem:[%s2647_s3 + $0x7c] ss:$12 sps:$4 sm:$0xff]   ;;  %v1903_v3 = vld [vmem:[%s2647_s3 + $0x80] ss:$12 sps:$4 sm:$0xff]   ;;  %v1907_v6 = vld [vmem:[%s2647_s3 + $0x98] ss:$12 sps:$4 sm:$0xff]  }
  0x1a   : > { %v1906_v4 = vld [vmem:[%s2647_s3 + $0x94] ss:$12 sps:$4 sm:$0xff]   ;;  %v1904_v5 = vld [vmem:[%s2647_s3 + $0x90] ss:$12 sps:$4 sm:$0xff]   ;;  %v1910_v7 = vld [vmem:[%s2647_s3 + $0xac] ss:$12 sps:$4 sm:$0xff]  }
  0x1b   : > { %665 = vmatpush1.bf16.msra.mxu0 %v1871_v20  ;;  %v1908_v8 = vld [vmem:[%s2647_s3 + $0xa8] ss:$12 sps:$4 sm:$0xff]   ;;  %v1911_v9 = vld [vmem:[%s2647_s3 + $0xb0] ss:$12 sps:$4 sm:$0xff]   ;;  %v231_v12 = vadd.s32 8, %v2170_v11  ;;  %v232_v16 = vadd.s32 16, %v2170_v11 }
  0x1c   : > { %1786 = vmatpush3.bf16.msra.mxu1 %v1870_v17  ;;  %666 = vmatprep.subr.bf16.mxu0 %v1872_v22  ;;  %v233_v17 = vadd.s32 24, %v2170_v11  ;;  %v2182_v20 = vld [vmem:[%s2646_s2] ss:$0 sm:$0xff]  ;;  %vm2650_vm0 = vcmp.lt.s32.totalorder %v2170_v11, 7  ;;  %vm903_vm1 = vcmp.lt.s32.totalorder %v2170_v11, 1  ;;  %v235_v46 = vadd.s32 40, %v2170_v11 }
  0x1d   : > { %1787 = vmatprep.subr.bf16.mxu1 %v1874_v23  ;;  %v257_v13 = vand.u32 15, %v231_v12  ;;  %v264_v41 = vand.u32 15, %v232_v16 }
  0x1e   : > { %v271_v42 = vand.u32 15, %v233_v17 }
  0x1f   : > { %667 = vmatpush1.bf16.msra.mxu0 %v1875_v24  ;;  %vm2190_vm2 = vcmp.ne.s32.totalorder %v257_v13, 15  ;;  %vm2215_vm3 = vcmp.ne.s32.totalorder %v264_v41, 0 }
  0x20   : > { %1788 = vmatpush3.bf16.msra.mxu1 %v1874_v23  ;;  %668 = vmatprep.subr.bf16.mxu0 %v1876_v25  ;;  %vm2219_vm4 = vcmp.ne.s32.totalorder %v271_v42, 15 }
  0x21   : > { %1789 = vmatprep.subr.bf16.mxu1 %v1878_v26 }
  0x23   : > { %669 = vmatpush1.bf16.msra.mxu0 %v1879_v27 }
  0x24   : > { %1790 = vmatpush3.bf16.msra.mxu1 %v1878_v26  ;;  %1807 = vmatprep.subr.bf16.mxu0 %v1883_v51 }
  0x25   : > { %1217 = vmatprep.subr.bf16.mxu1 %v1882_v49 }
  0x26   : > { %687 = vmatmul.mubr.bf16.vlgmr.msra.gmra.mrb[0].mxu0 %v486_v21 }
  0x27   : > { %1792 = vmatmul.mubr.bf16.vlgmr.msra.gmra.mrb[0].mxu1 %v487_v32  ;;  %696 = vmatprep.mubr.bf16.mxu0 %v1928_v2 }
  0x28   : > { %1795 = vmatprep.mubr.bf16.mxu1 %v488_v33  ;;  %1218 = vmatpush1.bf16.msra.mxu1 %v1880_v50 }
  0x29   : > { %1808 = vmatpush3.bf16.msra.mxu0 %v1883_v51  ;;  %1219 = vmatprep.subr.bf16.mxu1 %v1886_v52 }
  0x2a   : > { %1809 = vmatprep.subr.bf16.mxu0 %v1887_v54 }
  0x2c   : > { %1220 = vmatpush1.bf16.msra.mxu1 %v1884_v53 }
  0x2d   : > { %1810 = vmatpush3.bf16.msra.mxu0 %v1887_v54  ;;  %1221 = vmatprep.subr.bf16.mxu1 %v1890_v55 }
  0x2e   : > { %697 = vmatmul.mubr.bf16.gmra.mrb[4].mxu0 %v487_v32  ;;  %1811 = vmatprep.subr.bf16.mxu0 %v1891_v57 }
  0x2f   : > { %1796 = vmatmul.mubr.bf16.gmra.mrb[4].mxu1 %v489_v38  ;;  %706 = vmatprep.mubr.bf16.mxu0 %v1928_v2 }
  0x30   : > { %1799 = vmatprep.mubr.bf16.mxu1 %v490_v39  ;;  %1222 = vmatpush1.bf16.msra.mxu1 %v1888_v56 }
  0x31   : > { %1812 = vmatpush3.bf16.msra.mxu0 %v1891_v57  ;;  %1223 = vmatprep.subr.bf16.mxu1 %v1894_v58 }
  0x32   : > { %1813 = vmatprep.subr.bf16.mxu0 %v1895_v60 }
  0x34   : > { %1224 = vmatpush1.bf16.msra.mxu1 %v1892_v59 }
  0x35   : > { %1814 = vmatpush3.bf16.msra.mxu0 %v1895_v60  ;;  %1225 = vmatprep.subr.bf16.mxu1 %v1898_v61  ;;  %v285_v60 = vand.u32 15, %v235_v46 }
  0x36   : > { %707 = vmatmul.mubr.bf16.gmra.mrb[8].mxu0 %v488_v33  ;;  %1815 = vmatprep.subr.bf16.mxu0 %v1899_v63 }
  0x37   : > { %1800 = vmatmul.mubr.bf16.gmra.mrb[8].mxu1 %v491_v44  ;;  %716 = vmatprep.mubr.bf16.mxu0 %v1928_v2  ;;  %vm2249_vm6 = vcmp.ne.s32.totalorder %v285_v60, 15 }
  0x38   : > { %1803 = vmatprep.mubr.bf16.mxu1 %v492_v45  ;;  %1226 = vmatpush1.bf16.msra.mxu1 %v1896_v62 }
  0x39   : > { %1816 = vmatpush3.bf16.msra.mxu0 %v1899_v63  ;;  %1227 = vmatprep.subr.bf16.mxu1 %v1902_v0 }
  0x3a   : > { %1817 = vmatprep.subr.bf16.mxu0 %v1903_v3 }
  0x3c   : > { %1228 = vmatpush1.bf16.msra.mxu1 %v1900_v1 }
  0x3d   : > { %1818 = vmatpush3.bf16.msra.mxu0 %v1903_v3  ;;  %1229 = vmatprep.subr.bf16.mxu1 %v1906_v4  ;;  %v236_v3 = vadd.s32 48, %v2170_v11 }
  0x3e   : > { %717 = vmatmul.mubr.bf16.gmra.mrb[12].mxu0 %v489_v38  ;;  %1819 = vmatprep.subr.bf16.mxu0 %v1907_v6 }
  0x3f   : > { %1804 = vmatmul.mubr.bf16.gmra.mrb[12].mxu1 %v493_v48  ;;  %726 = vmatprep.mubr.bf16.mxu0 %v1928_v2  ;;  %v292_v42 = vand.u32 15, %v236_v3 }
  0x40   : > { %1249 = vmatprep.mubr.bf16.mxu1 %v1928_v2  ;;  %1230 = vmatpush1.bf16.msra.mxu1 %v1904_v5 }
  0x41   : > { %1820 = vmatpush3.bf16.msra.mxu0 %v1907_v6  ;;  %1231 = vmatprep.subr.bf16.mxu1 %v1910_v7  ;;  %vm2277_vm7 = vcmp.ne.s32.totalorder %v292_v42, 0 }
  0x42   : > { %1821 = vmatprep.subr.bf16.mxu0 %v1911_v9 }
  0x44   : > { %1232 = vmatpush1.bf16.msra.mxu1 %v1908_v8 }
  0x45   : > { %1822 = vmatpush3.bf16.msra.mxu0 %v1911_v9  ;;  %v237_v9 = vadd.s32 56, %v2170_v11 }
  0x46   : > { %727 = vmatmul.mubr.bf16.gmra.mrb[16].mxu0 %v490_v39 }
  0x47   : > { %736 = vmatprep.mubr.bf16.mxu0 %v1928_v2 }
  0x4e   : > { %737 = vmatmul.mubr.bf16.gmra.mrb[20].mxu0 %v491_v44 }
  0x4f   : > { %746 = vmatprep.mubr.bf16.mxu0 %v1928_v2 }
  0x56   : > { %747 = vmatmul.mubr.bf16.gmra.mrb[24].mxu0 %v492_v45  ;;  %v234_v45 = vadd.s32 32, %v2170_v11 }
  0x57   : > { %756 = vmatprep.mubr.bf16.mxu0 %v1928_v2 }
  0x58   : > { %v278_v59 = vand.u32 15, %v234_v45 }
  0x5a   : > { %vm2245_vm5 = vcmp.ne.s32.totalorder %v278_v59, 0  ;;  %v2258_v59 = vadd.s32 72, %v2170_v11 }
  0x5c   : > { %v313_v42 = vand.u32 15, %v2258_v59 }
  0x5e   : > { %757 = vmatmul.mubr.bf16.gmra.mrb[28].mxu0 %v493_v48  ;;  %vm2334_vm10 = vcmp.ne.s32.totalorder %v313_v42, 15 }
  0xf9   : > { %v2173_v14 = vpop.f32.mrb[0].mxu0 }
  0xfa   : > { %v1793_v15 = vpop.f32.mrb[0].mxu1  ;;  %v2177_v18 = vpop.f32.mrb[1].mxu0  ;;  %v887_v26 = vrot.slane %v2173_v14, 7 }
  0xfb   : > { %v2184_v21 = vpop.f32.mrb[1].mxu1  ;;  %v954_v22 = vrot.slane %v1793_v15, 1  ;;  %v692_v24 = vpop.f32.mrb[2].mxu0 }
  0xfc   : > { %v952_v23 = vrot.slane %v2184_v21, 1  ;;  %v1794_v25 = vpop.f32.mrb[2].mxu1  ;;  %v888_v27 = vrot.slane %v692_v24, 7  ;;  %v694_v33 = vpop.f32.mrb[3].mxu0 }
  0xfd   : > { %v955_v32 = vrot.slane %v1794_v25, 1  ;;  %v804_v38 = vpop.f32.mrb[3].mxu1  ;;  %v872_v39 = vadd.f32 %v2182_v20, %v694_v33 }
  0xfe   : > { %v953_v40 = vrot.slane %v804_v38, 1  ;;  %v918_v44 = vsel %vm903_vm1, %v887_v26, %v888_v27 }
  0xff   : > { %v981_v43 = vsel %vm2650_vm0, %v954_v22, %v955_v32  ;;  %v937_v47 = vadd.f32 %v918_v44, %v872_v39 }
 0x100   : > { %v982_v48 = vsel %vm2650_vm0, %v953_v40, %v954_v22  ;;  %v2209_v49 = vsel %vm2650_vm0, %v952_v23, %v953_v40 }
 0x101   : > { %v986_v50 = vsel %vm2190_vm2, %v982_v48, 0.0  ;;  %v698_v52 = vpop.f32.mrb[4].mxu0  ;;  %v299_v48 = vand.u32 15, %v237_v9 }
 0x102   : > { %v2213_v51 = vadd.f32 %v986_v50, %v937_v47  ;;  %v1797_v54 = vpop.f32.mrb[4].mxu1  ;;  %v889_v55 = vrot.slane %v698_v52, 7  ;;  %v700_v56 = vpop.f32.mrb[5].mxu0  ;;  %v2254_v52 = vadd.s32 64, %v2170_v11 }
 0x103   : > { %v817_v58 = vpop.f32.mrb[5].mxu1  ;;  %v873_v61 = vadd.f32 %v2182_v20, %v700_v56  ;;  %v702_v62 = vpop.f32.mrb[6].mxu0  ;;  %v958_v63 = vrot.slane %v1797_v54, 1  ;;  %vm2287_vm8 = vcmp.ne.s32.totalorder %v299_v48, 15 }
 0x104   : > { %v956_v0 = vrot.slane %v817_v58, 1  ;;  %v1798_v1 = vpop.f32.mrb[6].mxu1  ;;  %v917_v4 = vsel %vm903_vm1, %v888_v27, %v889_v55  ;;  %v890_v5 = vrot.slane %v702_v62, 7  ;;  %v704_v6 = vpop.f32.mrb[7].mxu0 }
 0x105   : > { %v959_v7 = vrot.slane %v1798_v1, 1  ;;  %v820_v8 = vpop.f32.mrb[7].mxu1  ;;  %v922_v10 = vsel %vm2215_vm3, %v917_v4, 0.0  ;;  %v874_v12 = vadd.f32 %v2182_v20, %v704_v6 }
 0x106   : > { %v980_v13 = vsel %vm2650_vm0, %v955_v32, %v956_v0  ;;  %v957_v15 = vrot.slane %v820_v8, 1  ;;  %v938_v16 = vadd.f32 %v922_v10, %v873_v61  ;;  %v916_v17 = vsel %vm903_vm1, %v889_v55, %v890_v5 }
 0x107   : > { %v988_v22 = vsel %vm2219_vm4, %v980_v13, 0.0  ;;  %v2239_v24 = vsel %vm2650_vm0, %v958_v63, %v959_v7  ;;  %v939_v25 = vadd.f32 %v916_v17, %v874_v12 }
 0x108   : > { %v978_v27 = vsel %vm2650_vm0, %v957_v15, %v958_v63  ;;  %v979_v33 = vsel %vm2650_vm0, %v956_v0, %v957_v15  ;;  %v1003_v32 = vadd.f32 %v981_v43, %v938_v16 }
 0x109   : > { %v1004_v38 = vadd.f32 %v988_v22, %v939_v25  ;;  %v708_v39 = vpop.f32.mrb[8].mxu0 }
 0x10a   : > { %v1801_v44 = vpop.f32.mrb[8].mxu1  ;;  %v1019_v45 = vmax.f32 %v1003_v32, 0.0  ;;  %v891_v46 = vrot.slane %v708_v39, 7  ;;  %v710_v47 = vpop.f32.mrb[9].mxu0 }
 0x10b   : > { %v833_v50 = vpop.f32.mrb[9].mxu1  ;;  %v1020_v43 = vmax.f32 %v1004_v38, 0.0  ;;  %v875_v54 = vadd.f32 %v2182_v20, %v710_v47  ;;  %v712_v55 = vpop.f32.mrb[10].mxu0  ;;  %v962_v63 = vrot.slane %v1801_v44, 1 }
 0x10c   : > { %v960_v56 = vrot.slane %v833_v50, 1  ;;  %v1802_v58 = vpop.f32.mrb[10].mxu1  ;;  %v915_v60 = vsel %vm903_vm1, %v890_v5, %v891_v46  ;;  %v892_v61 = vrot.slane %v712_v55, 7  ;;  %v714_v62 = vpop.f32.mrb[11].mxu0  ;;  %v990_v5 = vsel %vm2249_vm6, %v978_v27, 0.0 }
 0x10d   : > { %v963_v0 = vrot.slane %v1802_v58, 1  ;;  %v836_v1 = vpop.f32.mrb[11].mxu1  ;;  %v2262_v3 = vpack.c.bf16 %v1020_v43, %v1019_v45  ;;  %v924_v4 = vsel %vm2245_vm5, %v915_v60, 0.0  ;;  %v876_v6 = vadd.f32 %v2182_v20, %v714_v62 }
 0x10e   : > { %v976_v8 = vsel %vm2650_vm0, %v959_v7, %v960_v56  ;;  %v940_v9 = vadd.f32 %v924_v4, %v875_v54  ;;  %v914_v10 = vsel %vm903_vm1, %v891_v46, %v892_v61  ;;  %v961_v15 = vrot.slane %v836_v1, 1 }
 0x10f   : > { %v2275_v12 = vsel %vm2650_vm0, %v962_v63, %v963_v0  ;;  %v941_v13 = vadd.f32 %v914_v10, %v876_v6 }
 0x110   : > { %v1005_v16 = vadd.f32 %v979_v33, %v940_v9  ;;  %v2283_v7 = vsel %vm2650_vm0, %v961_v15, %v962_v63  ;;  %v975_v25 = vsel %vm2650_vm0, %v960_v56, %v961_v15  ;;  %v306_v33 = vand.u32 15, %v2254_v52 }
 0x111   : > { %v718_v17 = vpop.f32.mrb[12].mxu0  ;;  %v1006_v32 = vadd.f32 %v990_v5, %v941_v13 }
 0x112   : > { %v1805_v27 = vpop.f32.mrb[12].mxu1  ;;  %v893_v38 = vrot.slane %v718_v17, 7  ;;  %v720_v39 = vpop.f32.mrb[13].mxu0  ;;  %v1021_v55 = vmax.f32 %v1005_v16, 0.0  ;;  %vm2328_vm9 = vcmp.ne.s32.totalorder %v306_v33, 0 }
 0x113   : > { %v849_v45 = vpop.f32.mrb[13].mxu1  ;;  %v877_v46 = vadd.f32 %v2182_v20, %v720_v39  ;;  %v722_v47 = vpop.f32.mrb[14].mxu0  ;;  %v966_v50 = vrot.slane %v1805_v27, 1  ;;  %v1022_v63 = vmax.f32 %v1006_v32, 0.0  ;;  %v240_v39 = vadd.s32 80, %v2170_v11 }
 0x114   : > { %v964_v43 = vrot.slane %v849_v45, 1  ;;  %v1806_v54 = vpop.f32.mrb[14].mxu1  ;;  %v913_v56 = vsel %vm903_vm1, %v892_v61, %v893_v38  ;;  %v894_v58 = vrot.slane %v722_v47, 7  ;;  %v724_v48 = vpop.f32.mrb[15].mxu0  ;;  %v992_v61 = vsel %vm2287_vm8, %v976_v8, 0.0 }
 0x115   : > { %v967_v60 = vrot.slane %v1806_v54, 1  ;;  %v852_v62 = vpop.f32.mrb[15].mxu1  ;;  %v926_v52 = vsel %vm2277_vm7, %v913_v56, 0.0  ;;  %v878_v59 = vadd.f32 %v2182_v20, %v724_v48  ;;  %v2326_v16 = vpack.c.bf16 %v1022_v63, %v1021_v55 }
 0x116   : > { %v2301_v1 = vsel %vm2650_vm0, %v963_v0, %v964_v43  ;;  %v965_v4 = vrot.slane %v852_v62, 1  ;;  %v942_v6 = vadd.f32 %v926_v52, %v877_v46  ;;  %v912_v9 = vsel %vm903_vm1, %v893_v38, %v894_v58 }
 0x117   : > { %v2309_v10 = vsel %vm2650_vm0, %v966_v50, %v967_v60  ;;  %v943_v5 = vadd.f32 %v912_v9, %v878_v59  ;;  %v2315_v13 = vsel %vm2650_vm0, %v967_v60, %v952_v23  ;;  %v994_v62 = vsel %vm2334_vm10, %v2283_v7, 0.0 }
 0x118   : > { %v2319_v0 = vsel %vm2650_vm0, %v965_v4, %v966_v50  ;;  %v2323_v15 = vsel %vm2650_vm0, %v964_v43, %v965_v4  ;;  %v1007_v8 = vadd.f32 %v2239_v24, %v942_v6  ;;  %v241_v24 = vadd.s32 88, %v2170_v11 }
 0x119   : > { %v728_v17 = vpop.f32.mrb[16].mxu0  ;;  %v1008_v27 = vadd.f32 %v992_v61, %v943_v5  ;;  %v320_v63 = vand.u32 15, %v240_v39  ;;  %v1913_v61 = vld [vmem:[%s2021_s6 + $0x50] sm:$0xff] }
 0x11a   : > { %v1023_v32 = vmax.f32 %v1007_v8, 0.0  ;;  %v895_v21 = vrot.slane %v728_v17, 7  ;;  %v730_v23 = vpop.f32.mrb[17].mxu0  ;;  %v242_v8 = vadd.s32 96, %v2170_v11 }
 0x11b   : > { %v879_v45 = vadd.f32 %v2182_v20, %v730_v23  ;;  %v732_v46 = vpop.f32.mrb[18].mxu0  ;;  %v1024_v50 = vmax.f32 %v1008_v27, 0.0  ;;  %vm2351_vm11 = vcmp.ne.s32.totalorder %v320_v63, 0 }
 0x11c   : > { %v911_v43 = vsel %vm903_vm1, %v894_v58, %v895_v21  ;;  %v896_v33 = vrot.slane %v732_v46, 7  ;;  %v734_v54 = vpop.f32.mrb[19].mxu0  ;;  %v327_v58 = vand.u32 15, %v241_v24 }
 0x11d   : > { %v928_v55 = vsel %vm2328_vm9, %v911_v43, 0.0  ;;  %v880_v56 = vadd.f32 %v2182_v20, %v734_v54  ;;  %v2344_v48 = vpack.c.bf16 %v1024_v50, %v1023_v32 }
 0x11e   : > { %v944_v60 = vadd.f32 %v928_v55, %v879_v45  ;;  %v910_v42 = vsel %vm903_vm1, %v895_v21, %v896_v33  ;;  %vm2357_vm12 = vcmp.ne.s32.totalorder %v327_v58, 15 }
 0x11f   : > { %v945_v52 = vadd.f32 %v910_v42, %v880_v56  ;;  %v996_v55 = vsel %vm2357_vm12, %v2301_v1, 0.0  ;;  %v334_v56 = vand.u32 15, %v242_v8  ;;  %v2679_v1 = vmov 0 }
 0x120   : > { %v1009_v59 = vadd.f32 %v975_v25, %v944_v60  ;;  %v243_v25 = vadd.s32 104, %v2170_v11 }
 0x121   : > { %v738_v4 = vpop.f32.mrb[20].mxu0  ;;  %v1010_v6 = vadd.f32 %v994_v62, %v945_v52  ;;  %vm2375_vm13 = vcmp.ne.s32.totalorder %v334_v56, 0 }
 0x122   : > { %v897_v9 = vrot.slane %v738_v4, 7  ;;  %v740_v5 = vpop.f32.mrb[21].mxu0  ;;  %v1025_v17 = vmax.f32 %v1009_v59, 0.0  ;;  %v1915_v59 = vld [vmem:[%s2021_s6 + $0x60] sm:$0xff] }
 0x123   : > { %v881_v27 = vadd.f32 %v2182_v20, %v740_v5  ;;  %v742_v32 = vpop.f32.mrb[22].mxu0  ;;  %v1026_v21 = vmax.f32 %v1010_v6, 0.0  ;;  %v244_v6 = vadd.s32 112, %v2170_v11 }
 0x124   : > { %v909_v23 = vsel %vm903_vm1, %v896_v33, %v897_v9  ;;  %v898_v39 = vrot.slane %v742_v32, 7  ;;  %v744_v45 = vpop.f32.mrb[23].mxu0  ;;  %v341_v33 = vand.u32 15, %v243_v25 }
 0x125   : > { %v930_v46 = vsel %vm2351_vm11, %v909_v23, 0.0  ;;  %v882_v24 = vadd.f32 %v2182_v20, %v744_v45  ;;  %v2367_v50 = vpack.c.bf16 %v1026_v21, %v1025_v17  ;;  %v245_v21 = vadd.s32 120, %v2170_v11 }
 0x126   : > { %v946_v43 = vadd.f32 %v930_v46, %v881_v27  ;;  %v908_v54 = vsel %vm903_vm1, %v897_v9, %v898_v39  ;;  %vm2381_vm14 = vcmp.ne.s32.totalorder %v341_v33, 15 }
 0x127   : > { %v947_v60 = vadd.f32 %v908_v54, %v882_v24  ;;  %v2680_v1 = vsel %vm2381_vm14, 4294967295, %v2679_v1  ;;  %v998_v24 = vsel %vm2381_vm14, %v2319_v0, 0.0 }
 0x128   : > { %v1011_v42 = vadd.f32 %v2275_v12, %v946_v43  ;;  %v348_v43 = vand.u32 15, %v244_v6 }
 0x129   : > { %v748_v62 = vpop.f32.mrb[24].mxu0  ;;  %v1012_v63 = vadd.f32 %v996_v55, %v947_v60  ;;  %v250_v55 = vand.u32 15, %v2170_v11  ;;  %v355_v60 = vand.u32 15, %v245_v21 }
 0x12a   : > { %v1027_v52 = vmax.f32 %v1011_v42, 0.0  ;;  %v899_v58 = vrot.slane %v748_v62, 7  ;;  %v750_v4 = vpop.f32.mrb[25].mxu0  ;;  %vm2398_vm15 = vcmp.ne.s32.totalorder %v348_v43, 0  ;;  %v2681_v62 = vmov 0 }
 0x12b   : > { %v883_v9 = vadd.f32 %v2182_v20, %v750_v4  ;;  %v752_v5 = vpop.f32.mrb[26].mxu0  ;;  %v1028_v8 = vmax.f32 %v1012_v63, 0.0  ;;  %v2682_v62 = vsel %vm2398_vm15, 4294967295, %v2681_v62  ;;  %vm2405_vm0 = vcmp.ne.s32.totalorder %v250_v55, 0 }
 0x12c   : > { %v907_v12 = vsel %vm903_vm1, %v898_v39, %v899_v58  ;;  %v900_v17 = vrot.slane %v752_v5, 7  ;;  %v754_v27 = vpop.f32.mrb[27].mxu0  ;;  %vm2411_vm14 = vcmp.ne.s32.totalorder %v355_v60, 15 }
 0x12d   : > { %v932_v32 = vsel %vm2375_vm13, %v907_v12, 0.0  ;;  %v884_v25 = vadd.f32 %v2182_v20, %v754_v27  ;;  %v1038_v23 = vpack.c.bf16 %v1028_v8, %v1027_v52  ;;  %v2685_v12 = vmov 0 }
 0x12e   : > { %v948_v45 = vadd.f32 %v932_v32, %v883_v9  ;;  %v906_v46 = vsel %vm903_vm1, %v899_v58, %v900_v17  ;;  %v2686_v12 = vsel %vm2411_vm14, 4294967295, %v2685_v12 }
 0x12f   : > { %v949_v39 = vadd.f32 %v906_v46, %v884_v25  ;;  %v871_v25 = vadd.f32 %v2182_v20, %v2177_v18  ;;  %v1000_v18 = vsel %vm2411_vm14, %v2315_v13, 0.0  ;;  %vm2687_vm14 = vcmp.lt.s32.totalorder %v2170_v11, 7 }
 0x130   : > { %v1013_v54 = vadd.f32 %v2323_v15, %v948_v45  ;;  %v2683_v15 = vmov 0 }
 0x131   : > { %v758_v56 = vpop.f32.mrb[28].mxu0  ;;  %v1014_v33 = vadd.f32 %v998_v24, %v949_v39  ;;  %v2684_v15 = vsel %vm2405_vm0, 4294967295, %v2683_v15 }
 0x132   : > { %v901_v42 = vrot.slane %v758_v56, 7  ;;  %v760_v63 = vpop.f32.mrb[29].mxu0  ;;  %v1029_v52 = vmax.f32 %v1013_v54, 0.0 }
 0x133   : > { %v885_v58 = vadd.f32 %v2182_v20, %v760_v63  ;;  %v762_v4 = vpop.f32.mrb[30].mxu0  ;;  %v1030_v0 = vmax.f32 %v1014_v33, 0.0 }
 0x134   : > { %v905_v6 = vsel %vm903_vm1, %v900_v17, %v901_v42  ;;  %v902_v9 = vrot.slane %v762_v4, 7  ;;  %v764_v5 = vpop.f32.mrb[31].mxu0 }
 0x135   : > { %v934_v8 = vsel %vm2398_vm15, %v905_v6, 0.0  ;;  %v886_v27 = vadd.f32 %v2182_v20, %v764_v5  ;;  %v1039_v32 = vpack.c.bf16 %v1030_v0, %v1029_v52 }
 0x136   : > { %v950_v17 = vadd.f32 %v934_v8, %v885_v58  ;;  %v919_v21 = vsel %vm903_vm1, %v902_v9, %v887_v26  ;;  %v904_v45 = vsel %vm903_vm1, %v901_v42, %v902_v9  ;;  %v1018_v26 = vmax.f32 %v2213_v51, 0.0 }
 0x137   : > { %v920_v46 = vsel %vm2405_vm0, %v919_v21, 0.0  ;;  %v951_v24 = vadd.f32 %v904_v45, %v886_v27  ;;  %vm2688_vm0 = vmmov %vm2687_vm14 }
 0x138   : > { %v1015_v43 = vadd.f32 %v2309_v10, %v950_v17  ;;  %v936_v39 = vadd.f32 %v920_v46, %v871_v25  ;;  %vm2689_vm15 = vmmov %vm2688_vm0 }
 0x139   : > { %v1016_v20 = vadd.f32 %v1000_v18, %v951_v24 }
 0x13a   : > { %v1031_v54 = vmax.f32 %v1015_v43, 0.0  ;;  %v1001_v14 = vadd.f32 %v2209_v49, %v936_v39 }
 0x13b   : > { %v1032_v55 = vmax.f32 %v1016_v20, 0.0 }
 0x13c   : > { %v1017_v56 = vmax.f32 %v1001_v14, 0.0 }
 0x13d   : > { %v1040_v60 = vpack.c.bf16 %v1032_v55, %v1031_v54 }
 0x13e   : > { %v1033_v33 = vpack.c.bf16 %v1018_v26, %v1017_v56 }
 0x140   : > { %1250 = vmatmul.mubr.bf16.vlgmr.msra.gmra.mrb[16].mxu1 %v1033_v33  ;;  %1823 = vmatprep.mubr.bf16.mxu0 %v1033_v33 }
 0x141   : > { %1824 = vmatmul.mubr.bf16.vlgmr.msra.gmra.mrb[32].mxu0 %v2262_v3  ;;  %1259 = vmatprep.mubr.bf16.mxu1 %v1928_v2 }
 0x142   : > { %1827 = vmatprep.mubr.bf16.mxu0 %v2326_v16 }
 0x148   : > { %1260 = vmatmul.mubr.bf16.gmra.mrb[20].mxu1 %v2262_v3 }
 0x149   : > { %1828 = vmatmul.mubr.bf16.gmra.mrb[36].mxu0 %v2344_v48  ;;  %1269 = vmatprep.mubr.bf16.mxu1 %v1928_v2 }
 0x14a   : > { %1831 = vmatprep.mubr.bf16.mxu0 %v2367_v50 }
 0x150   : > { %1270 = vmatmul.mubr.bf16.gmra.mrb[24].mxu1 %v2326_v16 }
 0x151   : > { %1832 = vmatmul.mubr.bf16.gmra.mrb[40].mxu0 %v1038_v23  ;;  %1279 = vmatprep.mubr.bf16.mxu1 %v1928_v2 }
 0x152   : > { %1835 = vmatprep.mubr.bf16.mxu0 %v1039_v32 }
 0x158   : > { %1280 = vmatmul.mubr.bf16.gmra.mrb[28].mxu1 %v2344_v48  ;;  %v2457_v48 = vld [vmem:[%s2648_s4] ss:$0 sm:$0xff] }
 0x159   : > { %1836 = vmatmul.mubr.bf16.gmra.mrb[44].mxu0 %v1040_v60  ;;  %1289 = vmatprep.mubr.bf16.mxu1 %v1928_v2 }
 0x160   : > { %1290 = vmatmul.mubr.bf16.gmra.mrb[32].mxu1 %v2367_v50 }
 0x161   : > { %1299 = vmatprep.mubr.bf16.mxu1 %v1928_v2 }
 0x168   : > { %1300 = vmatmul.mubr.bf16.gmra.mrb[36].mxu1 %v1038_v23 }
 0x169   : > { %1309 = vmatprep.mubr.bf16.mxu1 %v1928_v2 }
 0x170   : > { %1310 = vmatmul.mubr.bf16.gmra.mrb[40].mxu1 %v1039_v32 }
 0x171   : > { %1319 = vmatprep.mubr.bf16.mxu1 %v1928_v2 }
 0x178   : > { %1320 = vmatmul.mubr.bf16.gmra.mrb[44].mxu1 %v1040_v60 }
 0x213   : > { %v2447_v49 = vpop.f32.mrb[16].mxu1 }
 0x214   : > { %v2449_v51 = vpop.f32.mrb[17].mxu1  ;;  %v1825_v3 = vpop.f32.mrb[32].mxu0  ;;  %v1450_v16 = vrot.slane %v2447_v49, 7 }
 0x215   : > { %v1255_v10 = vpop.f32.mrb[18].mxu1  ;;  %v2451_v13 = vpop.f32.mrb[33].mxu0  ;;  %v1516_v2 = vrot.slane %v1825_v3, 1 }
 0x216   : > { %v1451_v50 = vrot.slane %v1255_v10, 7  ;;  %v1257_v23 = vpop.f32.mrb[19].mxu1  ;;  %v1826_v42 = vpop.f32.mrb[34].mxu0  ;;  %v1514_v4 = vrot.slane %v2451_v13, 1 }
 0x217   : > { %v1435_v63 = vadd.f32 %v2457_v48, %v1257_v23  ;;  %v1517_v52 = vrot.slane %v1826_v42, 1  ;;  %v1367_v58 = vpop.f32.mrb[35].mxu0 }
 0x218   : > { %v1480_v0 = vsel %vm903_vm1, %v1450_v16, %v1451_v50  ;;  %v1515_v6 = vrot.slane %v1367_v58, 1 }
 0x219   : > { %v1499_v9 = vadd.f32 %v1480_v0, %v1435_v63  ;;  %v1542_v5 = vsel %vm2687_vm14, %v1516_v2, %v1517_v52  ;;  %vm2692_vm14 = vmmov %vm2688_vm0 }
 0x21a   : > { %v1543_v8 = vsel %vm2688_vm0, %v1515_v6, %v1516_v2  ;;  %v2473_v27 = vsel %vm2689_vm15, %v1514_v4, %v1515_v6  ;;  %vm2694_vm15 = vmmov %vm2688_vm0 }
 0x21b   : > { %v1547_v32 = vsel %vm2190_vm2, %v1543_v8, 0.0  ;;  %v1261_v25 = vpop.f32.mrb[20].mxu1  ;;  %vm2690_vm2 = vmmov %vm2688_vm0 }
 0x21c   : > { %v1563_v17 = vadd.f32 %v1547_v32, %v1499_v9  ;;  %v1452_v21 = vrot.slane %v1261_v25, 7  ;;  %v1263_v45 = vpop.f32.mrb[21].mxu1  ;;  %v1829_v46 = vpop.f32.mrb[36].mxu0 }
 0x21d   : > { %v1436_v24 = vadd.f32 %v2457_v48, %v1263_v45  ;;  %v1265_v43 = vpop.f32.mrb[22].mxu1  ;;  %v1380_v39 = vpop.f32.mrb[37].mxu0  ;;  %v1520_v56 = vrot.slane %v1829_v46, 1 }
 0x21e   : > { %v1579_v18 = vadd.f32 %v1563_v17, %v2031_v19  ;;  %v1479_v20 = vsel %vm903_vm1, %v1451_v50, %v1452_v21  ;;  %v1453_v54 = vrot.slane %v1265_v43, 7  ;;  %v1518_v14 = vrot.slane %v1380_v39, 1  ;;  %v1267_v55 = vpop.f32.mrb[23].mxu1  ;;  %v1830_v37 = vpop.f32.mrb[38].mxu0 }
 0x21f   : > { %v1484_v26 = vsel %vm2215_vm3, %v1479_v20, 0.0  ;;  %v1437_v19 = vadd.f32 %v2457_v48, %v1267_v55  ;;  %v1521_v60 = vrot.slane %v1830_v37, 1  ;;  %v1383_v33 = vpop.f32.mrb[39].mxu0  ;;  %vm2691_vm3 = vmmov %vm2688_vm0 }
 0x220   : > { %v1595_v3 = vmax.f32 %v1579_v18, 0.0  ;;  %v1500_v10 = vadd.f32 %v1484_v26, %v1436_v24  ;;  %v1541_v50 = vsel %vm2688_vm0, %v1517_v52, %v1518_v14  ;;  %v1478_v23 = vsel %vm903_vm1, %v1452_v21, %v1453_v54 }
 0x221   : > { %v1501_v42 = vadd.f32 %v1478_v23, %v1437_v19  ;;  %v1549_v2 = vsel %vm2219_vm4, %v1541_v50, 0.0  ;;  %v2499_v53 = vsel %vm2690_vm2, %v1520_v56, %v1521_v60  ;;  %v1519_v63 = vrot.slane %v1383_v33, 1  ;;  %vm2693_vm4 = vmmov %vm2688_vm0 }
 0x222   : > { %1611 = vst [vmem:[%s2486_s16 + $0x8] sm:$0xff] %v1595_v3  ;;  %v1564_v58 = vadd.f32 %v1542_v5, %v1500_v10  ;;  %vm2697_vm2 = vmmov %vm2688_vm0 }
 0x223   : > { %v1565_v0 = vadd.f32 %v1549_v2, %v1501_v42  ;;  %v1539_v6 = vsel %vm2691_vm3, %v1519_v63, %v1520_v56  ;;  %v1540_v52 = vsel %vm2692_vm14, %v1518_v14, %v1519_v63  ;;  %v1271_v9 = vpop.f32.mrb[24].mxu1  ;;  %vm2699_vm3 = vmmov %vm2688_vm0 }
 0x224   : > { %v1580_v8 = vadd.f32 %v1564_v58, %v2056_v28  ;;  %v1454_v32 = vrot.slane %v1271_v9, 7  ;;  %v1273_v57 = vpop.f32.mrb[25].mxu1  ;;  %v1833_v25 = vpop.f32.mrb[40].mxu0  ;;  %v1551_v50 = vsel %vm2249_vm6, %v1539_v6, 0.0  ;;  %vm2696_vm6 = vmmov %vm2688_vm0 }
 0x225   : > { %v1581_v17 = vadd.f32 %v1565_v0, %v2059_v29  ;;  %v1438_v21 = vadd.f32 %v2457_v48, %v1273_v57  ;;  %v1524_v45 = vrot.slane %v1833_v25, 1  ;;  %v1275_v5 = vpop.f32.mrb[26].mxu1  ;;  %v1396_v46 = vpop.f32.mrb[41].mxu0  ;;  %vm2700_vm14 = vmmov %vm2688_vm0 }
 0x226   : > { %v1596_v24 = vmax.f32 %v1580_v8, 0.0  ;;  %v1477_v43 = vsel %vm903_vm1, %v1453_v54, %v1454_v32  ;;  %v1455_v39 = vrot.slane %v1275_v5, 7  ;;  %v1522_v18 = vrot.slane %v1396_v46, 1  ;;  %v1277_v20 = vpop.f32.mrb[27].mxu1  ;;  %v1834_v28 = vpop.f32.mrb[42].mxu0 }
 0x227   : > { %v1597_v14 = vmax.f32 %v1581_v17, 0.0  ;;  %v1486_v55 = vsel %vm2245_vm5, %v1477_v43, 0.0  ;;  %v1439_v29 = vadd.f32 %v2457_v48, %v1277_v20  ;;  %v1525_v37 = vrot.slane %v1834_v28, 1  ;;  %v1399_v26 = vpop.f32.mrb[43].mxu0  ;;  %vm2695_vm5 = vmmov %vm2688_vm0 }
 0x228   : > { %1612 = vst [vmem:[%s2486_s16 + $0x10] sm:$0xff] %v1596_v24  ;;  %v1502_v56 = vadd.f32 %v1486_v55, %v1438_v21  ;;  %v1537_v19 = vsel %vm2693_vm4, %v1521_v60, %v1522_v18  ;;  %v1476_v54 = vsel %vm903_vm1, %v1454_v32, %v1455_v39  ;;  %v1523_v33 = vrot.slane %v1399_v26, 1 }
 0x229   : > { %1613 = vst [vmem:[%s2486_s16 + $0x18] sm:$0xff] %v1597_v14  ;;  %v1503_v3 = vadd.f32 %v1476_v54, %v1439_v29  ;;  %v2522_v10 = vsel %vm2694_vm15, %v1524_v45, %v1525_v37 }
 0x22a   : > { %v1566_v40 = vadd.f32 %v1540_v52, %v1502_v56  ;;  %v1535_v23 = vsel %vm2695_vm5, %v1523_v33, %v1524_v45  ;;  %v1536_v60 = vsel %vm2688_vm0, %v1522_v18, %v1523_v33 }
 0x22b   : > { %v1567_v42 = vadd.f32 %v1551_v50, %v1503_v3  ;;  %v1281_v2 = vpop.f32.mrb[28].mxu1 }
 0x22c   : > { %v1582_v63 = vadd.f32 %v1566_v40, %v2062_v30  ;;  %v1456_v58 = vrot.slane %v1281_v2, 7  ;;  %v1283_v0 = vpop.f32.mrb[29].mxu1  ;;  %v1837_v9 = vpop.f32.mrb[44].mxu0 }
 0x22d   : > { %v1583_v8 = vadd.f32 %v1567_v42, %v2065_v31  ;;  %v1440_v52 = vadd.f32 %v2457_v48, %v1283_v0  ;;  %v1528_v41 = vrot.slane %v1837_v9, 1  ;;  %v1285_v6 = vpop.f32.mrb[30].mxu1  ;;  %v1412_v32 = vpop.f32.mrb[45].mxu0 }
 0x22e   : > { %v1598_v57 = vmax.f32 %v1582_v63, 0.0  ;;  %v1475_v25 = vsel %vm903_vm1, %v1455_v39, %v1456_v58  ;;  %v1457_v17 = vrot.slane %v1285_v6, 7  ;;  %v1526_v21 = vrot.slane %v1412_v32, 1  ;;  %v1287_v45 = vpop.f32.mrb[31].mxu1  ;;  %v1838_v30 = vpop.f32.mrb[46].mxu0 }
 0x22f   : > { %v1599_v5 = vmax.f32 %v1583_v8, 0.0  ;;  %v1488_v46 = vsel %vm2277_vm7, %v1475_v25, 0.0  ;;  %v1441_v31 = vadd.f32 %v2457_v48, %v1287_v45  ;;  %v1529_v24 = vrot.slane %v1838_v30, 1  ;;  %v1415_v43 = vpop.f32.mrb[47].mxu0  ;;  %vm2698_vm7 = vmmov %vm2688_vm0  ;;  %v1912_v25 = vld [vmem:[%s2021_s6 + $0x48] sm:$0xff] }
 0x230   : > { %1614 = vst [vmem:[%s2486_s16 + $0x20] sm:$0xff] %v1598_v57  ;;  %v1504_v18 = vadd.f32 %v1488_v46, %v1440_v52  ;;  %v1533_v20 = vsel %vm2696_vm6, %v1525_v37, %v1526_v21  ;;  %v1474_v39 = vsel %vm903_vm1, %v1456_v58, %v1457_v17  ;;  %v1527_v28 = vrot.slane %v1415_v43, 1 }
 0x231   : > { %1615 = vst [vmem:[%s2486_s16 + $0x28] sm:$0xff] %v1599_v5  ;;  %v1505_v14 = vadd.f32 %v1474_v39, %v1441_v31  ;;  %v2546_v55 = vsel %vm2697_vm2, %v1528_v41, %v1529_v24  ;;  %v2552_v22 = vsel %vm2698_vm7, %v1529_v24, %v1514_v4  ;;  %v1553_v37 = vsel %vm2287_vm8, %v1537_v19, 0.0 }
 0x232   : > { %v1568_v29 = vadd.f32 %v2499_v53, %v1504_v18  ;;  %v2559_v26 = vsel %vm2699_vm3, %v1527_v28, %v1528_v41  ;;  %v2563_v56 = vsel %vm2700_vm14, %v1526_v21, %v1527_v28  ;;  %v1555_v52 = vsel %vm2334_vm10, %v1535_v23, 0.0 }
 0x233   : > { %v1569_v54 = vadd.f32 %v1553_v37, %v1505_v14  ;;  %v1291_v13 = vpop.f32.mrb[32].mxu1  ;;  %v1557_v39 = vsel %vm2357_vm12, %v1533_v20, 0.0  ;;  %vm2701_vm8 = vnez %v2680_v1  ;;  %vm2703_vm10 = vnez %v2684_v15 }
 0x234   : > { %v1584_v33 = vadd.f32 %v1568_v29, %v2073_v34  ;;  %v1458_v4 = vrot.slane %v1291_v13, 7  ;;  %v1293_v3 = vpop.f32.mrb[33].mxu1  ;;  %v1914_v13 = vld [vmem:[%s2021_s6 + $0x58] sm:$0xff] }
 0x235   : > { %v1585_v53 = vadd.f32 %v1569_v54, %v2076_v35  ;;  %v1442_v44 = vadd.f32 %v2457_v48, %v1293_v3  ;;  %v1295_v19 = vpop.f32.mrb[34].mxu1 }
 0x236   : > { %v1600_v40 = vmax.f32 %v1584_v33, 0.0  ;;  %v1473_v50 = vsel %vm903_vm1, %v1457_v17, %v1458_v4  ;;  %v1459_v42 = vrot.slane %v1295_v19, 7  ;;  %v1297_v2 = vpop.f32.mrb[35].mxu1 }
 0x237   : > { %v1601_v63 = vmax.f32 %v1585_v53, 0.0  ;;  %v1490_v58 = vsel %vm2328_vm9, %v1473_v50, 0.0  ;;  %v1443_v34 = vadd.f32 %v2457_v48, %v1297_v2  ;;  %vm2702_vm9 = vnez %v2682_v62 }
 0x238   : > { %1616 = vst [vmem:[%s2486_s16 + $0x30] sm:$0xff] %v1600_v40  ;;  %v1506_v0 = vadd.f32 %v1490_v58, %v1442_v44  ;;  %v1472_v35 = vsel %vm903_vm1, %v1458_v4, %v1459_v42 }
 0x239   : > { %1617 = vst [vmem:[%s2486_s16 + $0x38] sm:$0xff] %v1601_v63  ;;  %v1507_v9 = vadd.f32 %v1472_v35, %v1443_v34  ;;  %v1559_v63 = vsel %vm2701_vm8, %v2559_v26, 0.0 }
 0x23a   : > { %v1570_v8 = vadd.f32 %v1536_v60, %v1506_v0 }
 0x23b   : > { %v1571_v41 = vadd.f32 %v1555_v52, %v1507_v9  ;;  %v1301_v6 = vpop.f32.mrb[36].mxu1  ;;  %v1916_v52 = vld [vmem:[%s2021_s6 + $0x68] sm:$0xff] }
 0x23c   : > { %v1586_v32 = vadd.f32 %v1570_v8, %v2079_v36  ;;  %v1460_v38 = vrot.slane %v1301_v6, 7  ;;  %v1303_v57 = vpop.f32.mrb[37].mxu1 }
 0x23d   : > { %v1587_v17 = vadd.f32 %v1912_v25, %v1571_v41  ;;  %v1444_v21 = vadd.f32 %v2457_v48, %v1303_v57  ;;  %v1305_v45 = vpop.f32.mrb[38].mxu1 }
 0x23e   : > { %v1602_v30 = vmax.f32 %v1586_v32, 0.0  ;;  %v1471_v60 = vsel %vm903_vm1, %v1459_v42, %v1460_v38  ;;  %v1461_v47 = vrot.slane %v1305_v45, 7  ;;  %v1307_v23 = vpop.f32.mrb[39].mxu1 }
 0x23f   : > { %v1603_v5 = vmax.f32 %v1587_v17, 0.0  ;;  %v1492_v36 = vsel %vm2351_vm11, %v1471_v60, 0.0  ;;  %v1445_v46 = vadd.f32 %v2457_v48, %v1307_v23  ;;  %vm2704_vm11 = vnez %v2686_v12 }
 0x240   : > { %1618 = vst [vmem:[%s2486_s16 + $0x40] sm:$0xff] %v1602_v30  ;;  %v1508_v31 = vadd.f32 %v1492_v36, %v1444_v21  ;;  %v1470_v24 = vsel %vm903_vm1, %v1460_v38, %v1461_v47  ;;  %v1434_v21 = vadd.f32 %v2457_v48, %v2449_v51  ;;  %v1561_v49 = vsel %vm2704_vm11, %v2552_v22, 0.0  ;;  %v1918_v36 = vld [vmem:[%s2021_s6 + $0x78] sm:$0xff] }
 0x241   : > { %1619 = vst [vmem:[%s2486_s16 + $0x48] sm:$0xff] %v1603_v5  ;;  %v1509_v43 = vadd.f32 %v1470_v24, %v1445_v46 }
 0x242   : > { %v1572_v18 = vadd.f32 %v2522_v10, %v1508_v31  ;;  %v1919_v31 = vld [vmem:[%s2021_s6] sm:$0xff] }
 0x243   : > { %v1573_v28 = vadd.f32 %v1557_v39, %v1509_v43  ;;  %v1311_v14 = vpop.f32.mrb[40].mxu1 }
 0x244   : > { %v1588_v29 = vadd.f32 %v1913_v61, %v1572_v18  ;;  %v1462_v37 = vrot.slane %v1311_v14, 7  ;;  %v1313_v54 = vpop.f32.mrb[41].mxu1 }
 0x245   : > { %v1589_v33 = vadd.f32 %v1914_v13, %v1573_v28  ;;  %v1446_v4 = vadd.f32 %v2457_v48, %v1313_v54  ;;  %v1315_v3 = vpop.f32.mrb[42].mxu1 }
 0x246   : > { %v1604_v53 = vmax.f32 %v1588_v29, 0.0  ;;  %v1469_v10 = vsel %vm903_vm1, %v1461_v47, %v1462_v37  ;;  %v1463_v7 = vrot.slane %v1315_v3, 7  ;;  %v1317_v20 = vpop.f32.mrb[43].mxu1 }
 0x247   : > { %v1605_v44 = vmax.f32 %v1589_v33, 0.0  ;;  %v1494_v19 = vsel %vm2375_vm13, %v1469_v10, 0.0  ;;  %v1447_v40 = vadd.f32 %v2457_v48, %v1317_v20 }
 0x248   : > { %1620 = vst [vmem:[%s2486_s16 + $0x50] sm:$0xff] %v1604_v53  ;;  %v1510_v50 = vadd.f32 %v1494_v19, %v1446_v4  ;;  %v1468_v42 = vsel %vm903_vm1, %v1462_v37, %v1463_v7 }
 0x249   : > { %1621 = vst [vmem:[%s2486_s16 + $0x58] sm:$0xff] %v1605_v44  ;;  %v1511_v2 = vadd.f32 %v1468_v42, %v1447_v40 }
 0x24a   : > { %v1574_v58 = vadd.f32 %v2563_v56, %v1510_v50 }
 0x24b   : > { %v1575_v34 = vadd.f32 %v1559_v63, %v1511_v2  ;;  %v1321_v0 = vpop.f32.mrb[44].mxu1 }
 0x24c   : > { %v1590_v35 = vadd.f32 %v1915_v59, %v1574_v58  ;;  %v1464_v9 = vrot.slane %v1321_v0, 7  ;;  %v1323_v8 = vpop.f32.mrb[45].mxu1 }
 0x24d   : > { %v1591_v41 = vadd.f32 %v1916_v52, %v1575_v34  ;;  %v1448_v6 = vadd.f32 %v2457_v48, %v1323_v8  ;;  %v1325_v32 = vpop.f32.mrb[46].mxu1 }
 0x24e   : > { %v1606_v38 = vmax.f32 %v1590_v35, 0.0  ;;  %v1467_v1 = vsel %vm903_vm1, %v1463_v7, %v1464_v9  ;;  %v1465_v26 = vrot.slane %v1325_v32, 7  ;;  %v1327_v57 = vpop.f32.mrb[47].mxu1 }
 0x24f   : > { %v1607_v56 = vmax.f32 %v1591_v41, 0.0  ;;  %v1496_v25 = vsel %vm2702_vm9, %v1467_v1, 0.0  ;;  %v1449_v17 = vadd.f32 %v2457_v48, %v1327_v57 }
 0x250   : > { %1622 = vst [vmem:[%s2486_s16 + $0x60] sm:$0xff] %v1606_v38  ;;  %v1512_v45 = vadd.f32 %v1496_v25, %v1448_v6  ;;  %v1481_v30 = vsel %vm903_vm1, %v1465_v26, %v1450_v16  ;;  %v1466_v60 = vsel %vm903_vm1, %v1464_v9, %v1465_v26  ;;  %v1917_v16 = vld [vmem:[%s2021_s6 + $0x70] sm:$0xff] }
 0x251   : > { %1623 = vst [vmem:[%s2486_s16 + $0x68] sm:$0xff] %v1607_v56  ;;  %v1482_v62 = vsel %vm2703_vm10, %v1481_v30, 0.0  ;;  %v1513_v47 = vadd.f32 %v1466_v60, %v1449_v17 }
 0x252   : > { %v1576_v51 = vadd.f32 %v2546_v55, %v1512_v45  ;;  %v1498_v48 = vadd.f32 %v1482_v62, %v1434_v21 }
 0x253   : > { %v1577_v23 = vadd.f32 %v1561_v49, %v1513_v47 }
 0x254   : > { %v1592_v5 = vadd.f32 %v1917_v16, %v1576_v51  ;;  %v1562_v11 = vadd.f32 %v2473_v27, %v1498_v48 }
 0x255   : > { %v1593_v46 = vadd.f32 %v1918_v36, %v1577_v23 }
 0x256   : > { %v1608_v15 = vmax.f32 %v1592_v5, 0.0  ;;  %v1578_v24 = vadd.f32 %v1919_v31, %v1562_v11 }
 0x257   : > { %v1609_v43 = vmax.f32 %v1593_v46, 0.0 }
 0x258   : > { %1624 = vst [vmem:[%s2486_s16 + $0x70] sm:$0xff] %v1608_v15  ;;  %v1594_v18 = vmax.f32 %v1578_v24, 0.0 }
 0x259   : > { %1625 = vst [vmem:[%s2486_s16 + $0x78] sm:$0xff] %v1609_v43 }
 0x25a   : > { %1610 = vst [vmem:[%s2486_s16] sm:$0xff] %v1594_v18 }
 0x25b PF: > { %s15_s18 = sadd.s32 1, %s1926_s18  }
 0x25c   : > { %p12_p4 = scmp.ge.s32.totalorder %s15_s18, 4  }
 0x25e   :  { %14 = sbr.rel (!%p12_p4) target bundleno = 1 (0x1), region = 70 }

</bundles_post_ra>
